<compile_context>
chip_gen: v7x
topology: tpu7x:2x2x1
jax: 0.10.0
libtpu: 0.0.40
codegen_flags: <defaults>
</compile_context>

<pallas_src>
import functools

import jax
import jax.numpy as jnp
from jax.experimental import pallas as pl
from jax.experimental.pallas import tpu as pltpu


def _round_up(x, m):
    return pl.cdiv(x, m) * m


def _mlp_resampler_kernel(x_ref, w1_ref, b1_ref, w2_ref, b2_ref,
                          gamma_ref, beta_ref, o_ref, *, eps, valid_d):
    d_pad = o_ref.shape[-1]

    # Linear1 + ReLU.  Keep MXU operands in the weights' dtype (bf16 on
    # v6e/v7x runs at full MXU rate); accumulate in f32.
    x = x_ref[...].astype(w1_ref.dtype)
    h = jnp.dot(x, w1_ref[...], preferred_element_type=jnp.float32)
    h = jnp.maximum(h + b1_ref[...], 0.0)

    # Linear2 (dominant D x D matmul), same dtype policy.
    y = jnp.dot(h.astype(w2_ref.dtype), w2_ref[...],
                preferred_element_type=jnp.float32)
    y = y + b2_ref[...]

    # LayerNorm over the valid (unpadded) feature width, all in f32
    # (biased variance, like torch.nn.LayerNorm).
    if valid_d == d_pad:
        mean = jnp.mean(y, axis=-1, keepdims=True)
        centered = y - mean
        var = jnp.mean(centered * centered, axis=-1, keepdims=True)
    else:
        lane = jax.lax.broadcasted_iota(jnp.int32, (1, d_pad), 1)
        valid = lane < valid_d
        inv_d = 1.0 / float(valid_d)
        mean = jnp.sum(jnp.where(valid, y, 0.0), axis=-1, keepdims=True) * inv_d
        centered = jnp.where(valid, y - mean, 0.0)
        var = jnp.sum(centered * centered, axis=-1, keepdims=True) * inv_d

    y_norm = centered * jax.lax.rsqrt(var + eps)
    out = y_norm * gamma_ref[...] + beta_ref[...]
    o_ref[...] = out.astype(o_ref.dtype)


def mlp_resampler(embeds, mask, params, *, row_tile=256, eps=1e-5):
    """embeds: [B, S, P]; mask is unused (matches the PyTorch forward).

    `row_tile` is a tunable (multiple of 128, sweep 256-512 per TPU
    generation); it is clamped to the padded row count for small inputs.
    """
    del mask  # the reference module ignores the mask
    w1, b1, w2, b2 = params["w1"], params["b1"], params["w2"], params["b2"]
    gamma, beta = params["gamma"], params["beta"]

    B, S, P = embeds.shape
    D = w1.shape[1]
    out_dtype = embeds.dtype

    # Pad feature dims to lane width (128) -> lane-dense loads/stores; pad
    # the token count up to the (clamped) row tile.
    p_pad = int(_round_up(P, 128))
    d_pad = int(_round_up(D, 128))
    n = B * S
    row_tile = int(min(max(128, row_tile), _round_up(n, 128)))
    n_pad = int(_round_up(n, row_tile))

    x2d = jnp.pad(embeds.reshape(n, P), ((0, n_pad - n), (0, p_pad - P)))
    w1_p = jnp.pad(w1, ((0, p_pad - P), (0, d_pad - D)))
    w2_p = jnp.pad(w2, ((0, d_pad - D), (0, d_pad - D)))

    def _pad_vec(v):  # biases / LN params stay f32 (accuracy) and are tiny
        return jnp.pad(v.astype(jnp.float32), (0, d_pad - D)).reshape(1, d_pad)

    b1_p, b2_p, gamma_p, beta_p = map(_pad_vec, (b1, b2, gamma, beta))

    grid = (n_pad // row_tile,)
    kernel = functools.partial(_mlp_resampler_kernel, eps=eps, valid_d=D)

    # Explicit VMEM budget: double-buffered row tiles, single-buffered
    # weights, f32 intermediates, 2x headroom.  (v7x has only 64 MiB/TC; for
    # very large D use bf16 weights or a K-tiled W2 reduction.)
    w_bytes = (p_pad * d_pad + d_pad * d_pad) * w1_p.dtype.itemsize
    io_bytes = 2 * row_tile * (p_pad * x2d.dtype.itemsize
                               + d_pad * jnp.dtype(out_dtype).itemsize)
    body_bytes = 4 * row_tile * d_pad * 4
    vmem_bytes = int(min(100 * 2**20,
                         max(32 * 2**20,
                             2 * (w_bytes + io_bytes + body_bytes + 4 * d_pad * 4))))

    cost = pl.CostEstimate(
        flops=2 * n_pad * p_pad * d_pad + 2 * n_pad * d_pad * d_pad,
        transcendentals=n_pad,
        bytes_accessed=int(x2d.size * x2d.dtype.itemsize
                           + w1_p.size * w1_p.dtype.itemsize
                           + w2_p.size * w2_p.dtype.itemsize
                           + 4 * d_pad * 4
                           + n_pad * d_pad * jnp.dtype(out_dtype).itemsize),
    )

    row_spec_in = pl.BlockSpec((row_tile, p_pad), lambda i: (i, 0))
    row_spec_out = pl.BlockSpec((row_tile, d_pad), lambda i: (i, 0))
    const_map = lambda i: (0, 0)

    def build_call(single_buffer_weights):
        def wspec(shape):
            if single_buffer_weights:
                # Constant-index blocks: one buffer is enough; halves the
                # resident-weight VMEM footprint vs default double buffering.
                return pl.BlockSpec(shape, const_map, pipeline_mode=pl.Buffered(1))
            return pl.BlockSpec(shape, const_map)

        in_specs = [
            row_spec_in,                 # x rows
            wspec((p_pad, d_pad)),       # W1 (resident)
            wspec((1, d_pad)),           # b1
            wspec((d_pad, d_pad)),       # W2 (resident)
            wspec((1, d_pad)),           # b2
            wspec((1, d_pad)),           # gamma
            wspec((1, d_pad)),           # beta
        ]
        return pl.pallas_call(
            kernel,
            out_shape=jax.ShapeDtypeStruct((n_pad, d_pad), out_dtype),
            grid_spec=pltpu.PrefetchScalarGridSpec(
                num_scalar_prefetch=0,
                grid=grid,
                in_specs=in_specs,
                out_specs=row_spec_out,
            ),
            compiler_params=pltpu.CompilerParams(
                dimension_semantics=("parallel",),   # megacore shards rows
                vmem_limit_bytes=vmem_bytes),
            cost_estimate=cost,
        )

    args = (x2d, w1_p, b1_p, w2_p, b2_p, gamma_p, beta_p)
    try:
        out2d = build_call(True)(*args)
    except Exception:
        # Fallback for jax versions without Buffered(1) pipeline_mode support.
        out2d = build_call(False)(*args)

    return out2d[:n, :D].reshape(B, S, D)


def init_params(key, protein_repr_dim, output_repr_dim):
    """Deterministic synthetic init matching nn.Linear / nn.LayerNorm shapes."""
    k1, k2, k3, k4 = jax.random.split(key, 4)
    lim1 = 1.0 / jnp.sqrt(protein_repr_dim)
    lim2 = 1.0 / jnp.sqrt(output_repr_dim)
    return {
        # stored as [in, out] (transpose of torch's [out, in]) so the kernel
        # does x @ W directly.
        "w1": jax.random.uniform(k1, (protein_repr_dim, output_repr_dim),
                                 jnp.float32, -lim1, lim1),
        "b1": jax.random.uniform(k2, (output_repr_dim,), jnp.float32, -lim1, lim1),
        "w2": jax.random.uniform(k3, (output_repr_dim, output_repr_dim),
                                 jnp.float32, -lim2, lim2),
        "b2": jax.random.uniform(k4, (output_repr_dim,), jnp.float32, -lim2, lim2),
        "gamma": jnp.ones((output_repr_dim,), jnp.float32),
        "beta": jnp.zeros((output_repr_dim,), jnp.float32),
    }


def _reference(embeds, params, eps=1e-5):
    """Pure-JAX reference mirroring the kernel's matmul dtype policy."""
    w1, w2 = params["w1"], params["w2"]
    h = jnp.dot(embeds.astype(w1.dtype), w1,
                preferred_element_type=jnp.float32) + params["b1"]
    h = jnp.maximum(h, 0.0)
    y = jnp.dot(h.astype(w2.dtype), w2,
                preferred_element_type=jnp.float32) + params["b2"]
    mean = jnp.mean(y, axis=-1, keepdims=True)
    var = jnp.mean((y - mean) ** 2, axis=-1, keepdims=True)
    return (y - mean) / jnp.sqrt(var + eps) * params["gamma"] + params["beta"]


if __name__ == "__main__":
    key = jax.random.PRNGKey(0)
    B, S = 2, 8
    protein_repr_dim, output_repr_dim = 32, 32

    k_emb, k_params = jax.random.split(key)
    embeds = jax.random.normal(k_emb, (B, S, protein_repr_dim), jnp.float32)
    mask = jnp.ones((B, S), jnp.float32)  # unused by the module's forward
    params = init_params(k_params, protein_repr_dim, output_repr_dim)

    # f32 weights: matches the PyTorch module's math.
    out = jax.block_until_ready(mlp_resampler(embeds, mask, params))
    ref = _reference(embeds, params)
    assert out.shape == (B, S, output_repr_dim)
    assert jnp.allclose(out, ref, atol=1e-4, rtol=1e-4), "f32 mismatch vs reference"

    # bf16 weights: the MXU-friendly configuration recommended for v6e/v7x
    # (accumulation and LayerNorm stay f32; tolerance relaxed accordingly).
    params_bf16 = dict(params,
                       w1=params["w1"].astype(jnp.bfloat16),
                       w2=params["w2"].astype(jnp.bfloat16))
    out_bf16 = jax.block_until_ready(mlp_resampler(embeds, mask, params_bf16))
    ref_bf16 = _reference(embeds, params_bf16)
    assert out_bf16.shape == (B, S, output_repr_dim)
    assert jnp.allclose(out_bf16, ref_bf16, atol=1e-2, rtol=1e-2), \
        "bf16 mismatch vs reference"

    print("KERNEL_OK")
</pallas_src>

<mosaic_0001>
module attributes {stable_mosaic.version = 11 : i64} {
  func.func @_mlp_resampler_kernel(%arg0: i32, %arg1: memref<128x128xf32, #tpu.memory_space<vmem>>, %arg2: memref<128x128xf32, #tpu.memory_space<vmem>>, %arg3: memref<1x128xf32, #tpu.memory_space<vmem>>, %arg4: memref<128x128xf32, #tpu.memory_space<vmem>>, %arg5: memref<1x128xf32, #tpu.memory_space<vmem>>, %arg6: memref<1x128xf32, #tpu.memory_space<vmem>>, %arg7: memref<1x128xf32, #tpu.memory_space<vmem>>, %arg8: memref<128x128xf32, #tpu.memory_space<vmem>>) attributes {dimension_semantics = [#tpu.dimension_semantics<parallel>], iteration_bounds = array<i64: 1>, scalar_prefetch = 0 : i64, scratch_operands = 0 : i64, tpu.core_type = #tpu.core_type<tc>, window_params = [{transform_indices = @transform_0, window_bounds = array<i64: 128, 128>}, {pipeline_mode = #tpu.pipeline_mode<synchronous>, transform_indices = @transform_1, window_bounds = array<i64: 128, 128>}, {pipeline_mode = #tpu.pipeline_mode<synchronous>, transform_indices = @transform_2, window_bounds = array<i64: 1, 128>}, {pipeline_mode = #tpu.pipeline_mode<synchronous>, transform_indices = @transform_3, window_bounds = array<i64: 128, 128>}, {pipeline_mode = #tpu.pipeline_mode<synchronous>, transform_indices = @transform_4, window_bounds = array<i64: 1, 128>}, {pipeline_mode = #tpu.pipeline_mode<synchronous>, transform_indices = @transform_5, window_bounds = array<i64: 1, 128>}, {pipeline_mode = #tpu.pipeline_mode<synchronous>, transform_indices = @transform_6, window_bounds = array<i64: 1, 128>}, {transform_indices = @transform_7, window_bounds = array<i64: 128, 128>}]} {
    %c0 = arith.constant 0 : index
    %c0_0 = arith.constant 0 : index
    %0 = vector.load %arg1[%c0, %c0_0] : memref<128x128xf32, #tpu.memory_space<vmem>>, vector<128x128xf32>
    %c0_1 = arith.constant 0 : index
    %c0_2 = arith.constant 0 : index
    %1 = vector.load %arg2[%c0_1, %c0_2] : memref<128x128xf32, #tpu.memory_space<vmem>>, vector<128x128xf32>
    %cst = arith.constant dense<0.000000e+00> : vector<128x128xf32>
    %2 = tpu.matmul %0, %1, %cst {dimension_numbers = #tpu.dot_dimension_numbers<[1], [0], [0], [1], [0, 0, 1, 1], [], []>} : vector<128x128xf32>, vector<128x128xf32>, vector<128x128xf32> -> vector<128x128xf32>
    %c0_3 = arith.constant 0 : index
    %c0_4 = arith.constant 0 : index
    %3 = vector.load %arg3[%c0_3, %c0_4] : memref<1x128xf32, #tpu.memory_space<vmem>>, vector<1x128xf32>
    %4 = vector.broadcast %3 : vector<1x128xf32> to vector<128x128xf32>
    %5 = arith.addf %2, %4 : vector<128x128xf32>
    %cst_5 = arith.constant 0.000000e+00 : f32
    %6 = vector.broadcast %cst_5 : f32 to vector<128x128xf32>
    %7 = arith.maximumf %5, %6 : vector<128x128xf32>
    %c0_6 = arith.constant 0 : index
    %c0_7 = arith.constant 0 : index
    %8 = vector.load %arg4[%c0_6, %c0_7] : memref<128x128xf32, #tpu.memory_space<vmem>>, vector<128x128xf32>
    %cst_8 = arith.constant dense<0.000000e+00> : vector<128x128xf32>
    %9 = tpu.matmul %7, %8, %cst_8 {dimension_numbers = #tpu.dot_dimension_numbers<[1], [0], [0], [1], [0, 0, 1, 1], [], []>} : vector<128x128xf32>, vector<128x128xf32>, vector<128x128xf32> -> vector<128x128xf32>
    %c0_9 = arith.constant 0 : index
    %c0_10 = arith.constant 0 : index
    %10 = vector.load %arg5[%c0_9, %c0_10] : memref<1x128xf32, #tpu.memory_space<vmem>>, vector<1x128xf32>
    %11 = vector.broadcast %10 : vector<1x128xf32> to vector<128x128xf32>
    %12 = arith.addf %9, %11 : vector<128x128xf32>
    %13 = tpu.iota {dimensions = array<i32: 1>} : vector<1x128xi32>
    %c32_i32 = arith.constant 32 : i32
    %14 = vector.broadcast %c32_i32 : i32 to vector<1x128xi32>
    %15 = arith.cmpi slt, %13, %14 : vector<1x128xi32>
    %cst_11 = arith.constant 0.000000e+00 : f32
    %16 = vector.shape_cast %15 : vector<1x128xi1> to vector<1x128xi1>
    %17 = vector.broadcast %16 : vector<1x128xi1> to vector<128x128xi1>
    %18 = vector.broadcast %cst_11 : f32 to vector<128x128xf32>
    %19 = arith.select %17, %12, %18 : vector<128x128xi1>, vector<128x128xf32>
    %cst_12 = arith.constant dense<0.000000e+00> : vector<128xf32>
    %20 = vector.multi_reduction <add>, %19, %cst_12 [1] : vector<128x128xf32> to vector<128xf32>
    %21 = vector.shape_cast %20 : vector<128xf32> to vector<128x1xf32>
    %cst_13 = arith.constant 3.125000e-02 : f32
    %22 = vector.broadcast %cst_13 : f32 to vector<128x1xf32>
    %23 = arith.mulf %21, %22 : vector<128x1xf32>
    %24 = vector.broadcast %23 : vector<128x1xf32> to vector<128x128xf32>
    %25 = arith.subf %12, %24 : vector<128x128xf32>
    %cst_14 = arith.constant 0.000000e+00 : f32
    %26 = vector.shape_cast %15 : vector<1x128xi1> to vector<1x128xi1>
    %27 = vector.broadcast %26 : vector<1x128xi1> to vector<128x128xi1>
    %28 = vector.broadcast %cst_14 : f32 to vector<128x128xf32>
    %29 = arith.select %27, %25, %28 : vector<128x128xi1>, vector<128x128xf32>
    %30 = arith.mulf %29, %29 : vector<128x128xf32>
    %cst_15 = arith.constant dense<0.000000e+00> : vector<128xf32>
    %31 = vector.multi_reduction <add>, %30, %cst_15 [1] : vector<128x128xf32> to vector<128xf32>
    %32 = vector.shape_cast %31 : vector<128xf32> to vector<128x1xf32>
    %cst_16 = arith.constant 3.125000e-02 : f32
    %33 = vector.broadcast %cst_16 : f32 to vector<128x1xf32>
    %34 = arith.mulf %32, %33 : vector<128x1xf32>
    %cst_17 = arith.constant 9.99999974E-6 : f32
    %35 = vector.broadcast %cst_17 : f32 to vector<128x1xf32>
    %36 = arith.addf %34, %35 : vector<128x1xf32>
    %37 = math.rsqrt %36 : vector<128x1xf32>
    %38 = vector.broadcast %37 : vector<128x1xf32> to vector<128x128xf32>
    %39 = arith.mulf %29, %38 : vector<128x128xf32>
    %c0_18 = arith.constant 0 : index
    %c0_19 = arith.constant 0 : index
    %40 = vector.load %arg6[%c0_18, %c0_19] : memref<1x128xf32, #tpu.memory_space<vmem>>, vector<1x128xf32>
    %41 = vector.broadcast %40 : vector<1x128xf32> to vector<128x128xf32>
    %42 = arith.mulf %39, %41 : vector<128x128xf32>
    %c0_20 = arith.constant 0 : index
    %c0_21 = arith.constant 0 : index
    %43 = vector.load %arg7[%c0_20, %c0_21] : memref<1x128xf32, #tpu.memory_space<vmem>>, vector<1x128xf32>
    %44 = vector.broadcast %43 : vector<1x128xf32> to vector<128x128xf32>
    %45 = arith.addf %42, %44 : vector<128x128xf32>
    %c0_22 = arith.constant 0 : index
    %c0_23 = arith.constant 0 : index
    %46 = vector.load %arg8[%c0_22, %c0_23] : memref<128x128xf32, #tpu.memory_space<vmem>>, vector<128x128xf32>
    tpu.vector_store %arg8[%c0_22, %c0_23], %45 {strides = array<i32>} : memref<128x128xf32, #tpu.memory_space<vmem>>, vector<128x128xf32>,
    return
  }
  func.func @transform_0(%arg0: i32) -> (i32, i32) {
    %c0_i32 = arith.constant 0 : i32
    %c0_i32_0 = arith.constant 0 : i32
    return %arg0, %c0_i32 : i32, i32
  }
  func.func @transform_1(%arg0: i32) -> (i32, i32) {
    %c0_i32 = arith.constant 0 : i32
    %c0_i32_0 = arith.constant 0 : i32
    %c0_i32_1 = arith.constant 0 : i32
    return %c0_i32, %c0_i32_0 : i32, i32
  }
  func.func @transform_2(%arg0: i32) -> (i32, i32) {
    %c0_i32 = arith.constant 0 : i32
    %c0_i32_0 = arith.constant 0 : i32
    %c0_i32_1 = arith.constant 0 : i32
    return %c0_i32, %c0_i32_0 : i32, i32
  }
  func.func @transform_3(%arg0: i32) -> (i32, i32) {
    %c0_i32 = arith.constant 0 : i32
    %c0_i32_0 = arith.constant 0 : i32
    %c0_i32_1 = arith.constant 0 : i32
    return %c0_i32, %c0_i32_0 : i32, i32
  }
  func.func @transform_4(%arg0: i32) -> (i32, i32) {
    %c0_i32 = arith.constant 0 : i32
    %c0_i32_0 = arith.constant 0 : i32
    %c0_i32_1 = arith.constant 0 : i32
    return %c0_i32, %c0_i32_0 : i32, i32
  }
  func.func @transform_5(%arg0: i32) -> (i32, i32) {
    %c0_i32 = arith.constant 0 : i32
    %c0_i32_0 = arith.constant 0 : i32
    %c0_i32_1 = arith.constant 0 : i32
    return %c0_i32, %c0_i32_0 : i32, i32
  }
  func.func @transform_6(%arg0: i32) -> (i32, i32) {
    %c0_i32 = arith.constant 0 : i32
    %c0_i32_0 = arith.constant 0 : i32
    %c0_i32_1 = arith.constant 0 : i32
    return %c0_i32, %c0_i32_0 : i32, i32
  }
  func.func @transform_7(%arg0: i32) -> (i32, i32) {
    %c0_i32 = arith.constant 0 : i32
    %c0_i32_0 = arith.constant 0 : i32
    return %arg0, %c0_i32 : i32, i32
  }
}

module attributes {stable_mosaic.version = 11 : i64} {
  func.func @_mlp_resampler_kernel(%arg0: i32, %arg1: memref<128x128xf32, #tpu.memory_space<vmem>>, %arg2: memref<128x128xf32, #tpu.memory_space<vmem>>, %arg3: memref<1x128xf32, #tpu.memory_space<vmem>>, %arg4: memref<128x128xf32, #tpu.memory_space<vmem>>, %arg5: memref<1x128xf32, #tpu.memory_space<vmem>>, %arg6: memref<1x128xf32, #tpu.memory_space<vmem>>, %arg7: memref<1x128xf32, #tpu.memory_space<vmem>>, %arg8: memref<128x128xf32, #tpu.memory_space<vmem>>) attributes {dimension_semantics = [#tpu.dimension_semantics<parallel>], iteration_bounds = array<i64: 1>, scalar_prefetch = 0 : i64, scratch_operands = 0 : i64, tpu.core_type = #tpu.core_type<tc>, window_params = [{transform_indices = @transform_0, window_bounds = array<i64: 128, 128>}, {pipeline_mode = #tpu.pipeline_mode<synchronous>, transform_indices = @transform_1, window_bounds = array<i64: 128, 128>}, {pipeline_mode = #tpu.pipeline_mode<synchronous>, transform_indices = @transform_2, window_bounds = array<i64: 1, 128>}, {pipeline_mode = #tpu.pipeline_mode<synchronous>, transform_indices = @transform_3, window_bounds = array<i64: 128, 128>}, {pipeline_mode = #tpu.pipeline_mode<synchronous>, transform_indices = @transform_4, window_bounds = array<i64: 1, 128>}, {pipeline_mode = #tpu.pipeline_mode<synchronous>, transform_indices = @transform_5, window_bounds = array<i64: 1, 128>}, {pipeline_mode = #tpu.pipeline_mode<synchronous>, transform_indices = @transform_6, window_bounds = array<i64: 1, 128>}, {transform_indices = @transform_7, window_bounds = array<i64: 128, 128>}]} {
    %c0 = arith.constant 0 : index
    %c0_0 = arith.constant 0 : index
    %0 = vector.load %arg1[%c0, %c0_0] : memref<128x128xf32, #tpu.memory_space<vmem>>, vector<128x128xf32>
    %c0_1 = arith.constant 0 : index
    %c0_2 = arith.constant 0 : index
    %1 = vector.load %arg2[%c0_1, %c0_2] : memref<128x128xf32, #tpu.memory_space<vmem>>, vector<128x128xf32>
    %cst = arith.constant dense<0.000000e+00> : vector<128x128xf32>
    %2 = tpu.matmul %0, %1, %cst {dimension_numbers = #tpu.dot_dimension_numbers<[1], [0], [0], [1], [0, 0, 1, 1], [], []>} : vector<128x128xf32>, vector<128x128xf32>, vector<128x128xf32> -> vector<128x128xf32>
    %c0_3 = arith.constant 0 : index
    %c0_4 = arith.constant 0 : index
    %3 = vector.load %arg3[%c0_3, %c0_4] : memref<1x128xf32, #tpu.memory_space<vmem>>, vector<1x128xf32>
    %4 = vector.broadcast %3 : vector<1x128xf32> to vector<128x128xf32>
    %5 = arith.addf %2, %4 : vector<128x128xf32>
    %cst_5 = arith.constant 0.000000e+00 : f32
    %6 = vector.broadcast %cst_5 : f32 to vector<128x128xf32>
    %7 = arith.maximumf %5, %6 : vector<128x128xf32>
    %c0_6 = arith.constant 0 : index
    %c0_7 = arith.constant 0 : index
    %8 = vector.load %arg4[%c0_6, %c0_7] : memref<128x128xf32, #tpu.memory_space<vmem>>, vector<128x128xf32>
    %cst_8 = arith.constant dense<0.000000e+00> : vector<128x128xf32>
    %9 = tpu.matmul %7, %8, %cst_8 {dimension_numbers = #tpu.dot_dimension_numbers<[1], [0], [0], [1], [0, 0, 1, 1], [], []>} : vector<128x128xf32>, vector<128x128xf32>, vector<128x128xf32> -> vector<128x128xf32>
    %c0_9 = arith.constant 0 : index
    %c0_10 = arith.constant 0 : index
    %10 = vector.load %arg5[%c0_9, %c0_10] : memref<1x128xf32, #tpu.memory_space<vmem>>, vector<1x128xf32>
    %11 = vector.broadcast %10 : vector<1x128xf32> to vector<128x128xf32>
    %12 = arith.addf %9, %11 : vector<128x128xf32>
    %13 = tpu.iota {dimensions = array<i32: 1>} : vector<1x128xi32>
    %c32_i32 = arith.constant 32 : i32
    %14 = vector.broadcast %c32_i32 : i32 to vector<1x128xi32>
    %15 = arith.cmpi slt, %13, %14 : vector<1x128xi32>
    %cst_11 = arith.constant 0.000000e+00 : f32
    %16 = vector.shape_cast %15 : vector<1x128xi1> to vector<1x128xi1>
    %17 = vector.broadcast %16 : vector<1x128xi1> to vector<128x128xi1>
    %18 = vector.broadcast %cst_11 : f32 to vector<128x128xf32>
    %19 = arith.select %17, %12, %18 : vector<128x128xi1>, vector<128x128xf32>
    %cst_12 = arith.constant dense<0.000000e+00> : vector<128xf32>
    %20 = vector.multi_reduction <add>, %19, %cst_12 [1] : vector<128x128xf32> to vector<128xf32>
    %21 = vector.shape_cast %20 : vector<128xf32> to vector<128x1xf32>
    %cst_13 = arith.constant 3.125000e-02 : f32
    %22 = vector.broadcast %cst_13 : f32 to vector<128x1xf32>
    %23 = arith.mulf %21, %22 : vector<128x1xf32>
    %24 = vector.broadcast %23 : vector<128x1xf32> to vector<128x128xf32>
    %25 = arith.subf %12, %24 : vector<128x128xf32>
    %cst_14 = arith.constant 0.000000e+00 : f32
    %26 = vector.shape_cast %15 : vector<1x128xi1> to vector<1x128xi1>
    %27 = vector.broadcast %26 : vector<1x128xi1> to vector<128x128xi1>
    %28 = vector.broadcast %cst_14 : f32 to vector<128x128xf32>
    %29 = arith.select %27, %25, %28 : vector<128x128xi1>, vector<128x128xf32>
    %30 = arith.mulf %29, %29 : vector<128x128xf32>
    %cst_15 = arith.constant dense<0.000000e+00> : vector<128xf32>
    %31 = vector.multi_reduction <add>, %30, %cst_15 [1] : vector<128x128xf32> to vector<128xf32>
    %32 = vector.shape_cast %31 : vector<128xf32> to vector<128x1xf32>
    %cst_16 = arith.constant 3.125000e-02 : f32
    %33 = vector.broadcast %cst_16 : f32 to vector<128x1xf32>
    %34 = arith.mulf %32, %33 : vector<128x1xf32>
    %cst_17 = arith.constant 9.99999974E-6 : f32
    %35 = vector.broadcast %cst_17 : f32 to vector<128x1xf32>
    %36 = arith.addf %34, %35 : vector<128x1xf32>
    %37 = math.rsqrt %36 : vector<128x1xf32>
    %38 = vector.broadcast %37 : vector<128x1xf32> to vector<128x128xf32>
    %39 = arith.mulf %29, %38 : vector<128x128xf32>
    %c0_18 = arith.constant 0 : index
    %c0_19 = arith.constant 0 : index
    %40 = vector.load %arg6[%c0_18, %c0_19] : memref<1x128xf32, #tpu.memory_space<vmem>>, vector<1x128xf32>
    %41 = vector.broadcast %40 : vector<1x128xf32> to vector<128x128xf32>
    %42 = arith.mulf %39, %41 : vector<128x128xf32>
    %c0_20 = arith.constant 0 : index
    %c0_21 = arith.constant 0 : index
    %43 = vector.load %arg7[%c0_20, %c0_21] : memref<1x128xf32, #tpu.memory_space<vmem>>, vector<1x128xf32>
    %44 = vector.broadcast %43 : vector<1x128xf32> to vector<128x128xf32>
    %45 = arith.addf %42, %44 : vector<128x128xf32>
    %c0_22 = arith.constant 0 : index
    %c0_23 = arith.constant 0 : index
    %46 = vector.load %arg8[%c0_22, %c0_23] : memref<128x128xf32, #tpu.memory_space<vmem>>, vector<128x128xf32>
    tpu.vector_store %arg8[%c0_22, %c0_23], %45 {strides = array<i32>} : memref<128x128xf32, #tpu.memory_space<vmem>>, vector<128x128xf32>,
    return
  }
  func.func @transform_0(%arg0: i32) -> (i32, i32) {
    %c0_i32 = arith.constant 0 : i32
    %c0_i32_0 = arith.constant 0 : i32
    return %arg0, %c0_i32 : i32, i32
  }
  func.func @transform_1(%arg0: i32) -> (i32, i32) {
    %c0_i32 = arith.constant 0 : i32
    %c0_i32_0 = arith.constant 0 : i32
    %c0_i32_1 = arith.constant 0 : i32
    return %c0_i32, %c0_i32_0 : i32, i32
  }
  func.func @transform_2(%arg0: i32) -> (i32, i32) {
    %c0_i32 = arith.constant 0 : i32
    %c0_i32_0 = arith.constant 0 : i32
    %c0_i32_1 = arith.constant 0 : i32
    return %c0_i32, %c0_i32_0 : i32, i32
  }
  func.func @transform_3(%arg0: i32) -> (i32, i32) {
    %c0_i32 = arith.constant 0 : i32
    %c0_i32_0 = arith.constant 0 : i32
    %c0_i32_1 = arith.constant 0 : i32
    return %c0_i32, %c0_i32_0 : i32, i32
  }
  func.func @transform_4(%arg0: i32) -> (i32, i32) {
    %c0_i32 = arith.constant 0 : i32
    %c0_i32_0 = arith.constant 0 : i32
    %c0_i32_1 = arith.constant 0 : i32
    return %c0_i32, %c0_i32_0 : i32, i32
  }
  func.func @transform_5(%arg0: i32) -> (i32, i32) {
    %c0_i32 = arith.constant 0 : i32
    %c0_i32_0 = arith.constant 0 : i32
    %c0_i32_1 = arith.constant 0 : i32
    return %c0_i32, %c0_i32_0 : i32, i32
  }
  func.func @transform_6(%arg0: i32) -> (i32, i32) {
    %c0_i32 = arith.constant 0 : i32
    %c0_i32_0 = arith.constant 0 : i32
    %c0_i32_1 = arith.constant 0 : i32
    return %c0_i32, %c0_i32_0 : i32, i32
  }
  func.func @transform_7(%arg0: i32) -> (i32, i32) {
    %c0_i32 = arith.constant 0 : i32
    %c0_i32_0 = arith.constant 0 : i32
    return %arg0, %c0_i32 : i32, i32
  }
}

</mosaic_0001>

<bundles_post_ra>
// kernel: tpu_custom_call.1
= control target key start
LH: loop header
LB: loop body
LE: loop exit
PB: predicated region body
PF: predicated region fallthrough
CT: control target
= control target key end

     0   :  { %12 = vsyncpa [#allocation3], 0  ;;  %s1477_s0 = inlined_call_operand.hbm [shape: f32[128,128], index: 0, kind: input, shape index: {}]   ;;  %s1478_s1 = inlined_call_operand.hbm [shape: f32[128,128], index: 1, kind: input, shape index: {}]   ;;  %s1479_s2 = inlined_call_operand.vmem [shape: f32[1,128], index: 2, kind: input, shape index: {}]   ;;  %s1480_s3 = inlined_call_operand.hbm [shape: f32[128,128], index: 3, kind: input, shape index: {}]   ;;  %s1481_s4 = inlined_call_operand.vmem [shape: f32[1,128], index: 4, kind: input, shape index: {}]   ;;  %s1482_s5 = inlined_call_operand.vmem [shape: f32[1,128], index: 5, kind: input, shape index: {}]   ;;  %s1483_s6 = inlined_call_operand.vmem [shape: f32[1,128], index: 6, kind: input, shape index: {}]   ;;  %s1484_s7 = inlined_call_operand.hbm [shape: f32[128,128], index: 7, kind: output, shape index: {}]  }
   0x1   :  { %13 = vsyncpa [#allocation6], 0 }
   0x2   :  { %14 = vsyncpa [#allocation4], 0  ;;  %s1105_s24 = smov [#allocation5]   ;;  %s1106_s26 = smov [#allocation2]  }
   0x3   :  { %s32_s25 = sshll.u32 %s1105_s24, 4  ;;  %s20_s27 = sshll.u32 %s1106_s26, 4  ;;  %s33_s25 = int_to_ptr.vmem [resolvable:$true] %s32_s25  ;;  %s1151_s27 = int_to_ptr.vmem [resolvable:$true] %s20_s27 }
   0x4   :  { %s1011_s30 = scalar_lea.hbm %s1478_s1, 2048 }
   0x5   :  { %p1012_p0 = scmp.ne.s32.totalorder %s1478_s1, %s1011_s30  ;;  %p1015_p1 = scmp.lt.u32.totalorder %s1011_s30, %s1478_s1 }
   0x7   :  { %p1017_p2 = pnand %p1015_p1, %p1012_p0 }
   0x9   :  { %1020 = shalt.err (!%p1017_p2)
}
   0xa   :  { %s1021_s12 = scalar_lea.vmem %s33_s25, 2048  ;;  %p1026_p4 = scmp.lt.s32.totalorder %s33_s25, %s33_s25 }
   0xb   :  { %p1022_p3 = scmp.ne.s32.totalorder %s33_s25, %s1021_s12  ;;  %p1027_p5 = scmp.lt.s32.totalorder %s1021_s12, %s1021_s12 }
   0xd   :  { %p1028_p6 = por %p1027_p5, %p1026_p4 }
   0xf   :  { %p1029_p7 = pnand %p1028_p6, %p1022_p3 }
  0x11   :  { %1032 = shalt.err (!%p1029_p7)
}
  0x12   :  { %s1107_s13 = smov 128   ;;  %s1108_s14 = smov 8  }
  0x13   :  { %38 = dma.hbm_to_vmem [thread:$0]  %s1478_s1, 2048, %s33_s25, [#allocation6], %s1107_s13, %s1107_s13, %s1108_s14  }
  0x14   :  { %s1033_s19 = scalar_lea.hbm %s1477_s0, 2048 }
  0x15   :  { %p1034_p8 = scmp.ne.s32.totalorder %s1477_s0, %s1033_s19  ;;  %p1037_p9 = scmp.lt.u32.totalorder %s1033_s19, %s1477_s0 }
  0x17   :  { %p1039_p10 = pnand %p1037_p9, %p1034_p8 }
  0x19   :  { %1042 = shalt.err (!%p1039_p10)
}
  0x1a   :  { %s1043_s24 = scalar_lea.vmem %s1151_s27, 2048  ;;  %p1048_p12 = scmp.lt.s32.totalorder %s1151_s27, %s1151_s27 }
  0x1b   :  { %p1044_p11 = scmp.ne.s32.totalorder %s1151_s27, %s1043_s24  ;;  %p1049_p13 = scmp.lt.s32.totalorder %s1043_s24, %s1043_s24 }
  0x1d   :  { %p1050_p0 = por %p1049_p13, %p1048_p12 }
  0x1f   :  { %p1051_p1 = pnand %p1050_p0, %p1044_p11 }
  0x21   :  { %1054 = shalt.err (!%p1051_p1)
}
  0x22   :  { %26 = dma.hbm_to_vmem [thread:$0]  %s1477_s0, 2048, %s1151_s27, [#allocation3], %s1107_s13, %s1107_s13, %s1108_s14  }
  0x23   :  { %s1109_s26 = smov [#allocation7]   ;;  %s1055_s8 = scalar_lea.hbm %s1480_s3, 2048 }
  0x24   :  { %s46_s28 = sshll.u32 %s1109_s26, 4  ;;  %p1056_p2 = scmp.ne.s32.totalorder %s1480_s3, %s1055_s8  ;;  %s47_s28 = int_to_ptr.vmem [resolvable:$true] %s46_s28 }
  0x25   :  { %p1059_p3 = scmp.lt.u32.totalorder %s1055_s8, %s1480_s3 }
  0x27   :  { %p1061_p4 = pnand %p1059_p3, %p1056_p2 }
  0x29   :  { %1064 = shalt.err (!%p1061_p4)
}
  0x2a   :  { %s1065_s15 = scalar_lea.vmem %s47_s28, 2048  ;;  %p1070_p6 = scmp.lt.s32.totalorder %s47_s28, %s47_s28 }
  0x2b   :  { %p1066_p5 = scmp.ne.s32.totalorder %s47_s28, %s1065_s15  ;;  %p1071_p7 = scmp.lt.s32.totalorder %s1065_s15, %s1065_s15 }
  0x2d   :  { %p1072_p8 = por %p1071_p7, %p1070_p6 }
  0x2f   :  { %p1073_p9 = pnand %p1072_p8, %p1066_p5 }
  0x31   :  { %1076 = shalt.err (!%p1073_p9)
}
  0x32   :  { %52 = dma.hbm_to_vmem [thread:$0]  %s1480_s3, 2048, %s47_s28, [#allocation6], %s1107_s13, %s1107_s13, %s1108_s14  }
  0x33   :  { %1099 = dma.done.wait [#allocation3], 2048  }
  0x34   :  { %1100 = vsyncadd [#allocation3], 4294965248 }
  0x35   :  { %1101 = dma.done.wait [#allocation6], 4096  }
  0x36   :  { %1102 = vsyncadd [#allocation6], 4294963200  ;;  %v84_v0 = vld [vmem:[#allocation5] sm:$0xff]  ;;  %v85_v1 = vld [vmem:[#allocation5 + $0x8] sm:$0xff] }
  0x37   :  { %v86_v2 = vld [vmem:[#allocation5 + $0x10] sm:$0xff]  ;;  %v909_v3 = vpack.c.bf16 %v85_v1, %v84_v0  ;;  %v87_v4 = vld [vmem:[#allocation5 + $0x18] sm:$0xff]  ;;  %v88_v6 = vld [vmem:[#allocation5 + $0x20] sm:$0xff] }
  0x38   :  { %v913_v5 = vpack.c.bf16 %v87_v4, %v86_v2  ;;  %v89_v7 = vld [vmem:[#allocation5 + $0x28] sm:$0xff]  ;;  %v68_v9 = vld [vmem:[#allocation2] sm:$0xff]  ;;  %v90_v10 = vld [vmem:[#allocation5 + $0x30] sm:$0xff] }
  0x39   :  { %910 = vmatprep.subr.bf16.mxu0 %v909_v3  ;;  %v917_v8 = vpack.c.bf16 %v89_v7, %v88_v6  ;;  %v91_v11 = vld [vmem:[#allocation5 + $0x38] sm:$0xff]  ;;  %829 = vmatprep.mubr.f32.mxu0 %v68_v9  ;;  %v92_v13 = vld [vmem:[#allocation5 + $0x40] sm:$0xff]  ;;  %v93_v14 = vld [vmem:[#allocation5 + $0x48] sm:$0xff] }
  0x3a   :  { %912 = vmatpush3.bf16.msra.mxu0 %v909_v3  ;;  %v921_v12 = vpack.c.bf16 %v91_v11, %v90_v10  ;;  %v268_v15 = vld [vmem:[#allocation7] sm:$0xff]  ;;  %v269_v16 = vld [vmem:[#allocation7 + $0x8] sm:$0xff]  ;;  %v270_v17 = vld [vmem:[#allocation7 + $0x10] sm:$0xff]  ;;  %v925_v21 = vpack.c.bf16 %v93_v14, %v92_v13 }
  0x3b   :  { %914 = vmatprep.subr.bf16.mxu0 %v913_v5  ;;  %v271_v18 = vld [vmem:[#allocation7 + $0x18] sm:$0xff]  ;;  %v941_v19 = vpack.c.bf16 %v269_v16, %v268_v15  ;;  %v272_v22 = vld [vmem:[#allocation7 + $0x20] sm:$0xff]  ;;  %v273_v23 = vld [vmem:[#allocation7 + $0x28] sm:$0xff] }
  0x3c   :  { %v945_v20 = vpack.c.bf16 %v271_v18, %v270_v17  ;;  %v94_v24 = vld [vmem:[#allocation5 + $0x50] sm:$0xff]  ;;  %v95_v25 = vld [vmem:[#allocation5 + $0x58] sm:$0xff]  ;;  %v949_v26 = vpack.c.bf16 %v273_v23, %v272_v22  ;;  %v96_v30 = vld [vmem:[#allocation5 + $0x60] sm:$0xff] }
  0x3d   :  { %942 = vmatprep.subr.bf16.mxu1 %v941_v19  ;;  %v929_v27 = vpack.c.bf16 %v95_v25, %v94_v24  ;;  %v274_v28 = vld [vmem:[#allocation7 + $0x30] sm:$0xff]  ;;  %v275_v29 = vld [vmem:[#allocation7 + $0x38] sm:$0xff]  ;;  %v97_v31 = vld [vmem:[#allocation5 + $0x68] sm:$0xff] }
  0x3e   :  { %916 = vmatpush3.bf16.msra.mxu0 %v913_v5  ;;  %944 = vmatpush3.bf16.msra.mxu1 %v941_v19  ;;  %v953_v32 = vpack.c.bf16 %v275_v29, %v274_v28  ;;  %v933_v33 = vpack.c.bf16 %v97_v31, %v96_v30  ;;  %v276_v34 = vld [vmem:[#allocation7 + $0x40] sm:$0xff]  ;;  %v277_v35 = vld [vmem:[#allocation7 + $0x48] sm:$0xff]  ;;  %v98_v36 = vld [vmem:[#allocation5 + $0x70] sm:$0xff] }
  0x3f   :  { %918 = vmatprep.subr.bf16.mxu0 %v917_v8  ;;  %946 = vmatprep.subr.bf16.mxu1 %v945_v20  ;;  %v99_v37 = vld [vmem:[#allocation5 + $0x78] sm:$0xff]  ;;  %v957_v38 = vpack.c.bf16 %v277_v35, %v276_v34  ;;  %v278_v40 = vld [vmem:[#allocation7 + $0x50] sm:$0xff]  ;;  %v280_v43 = vld [vmem:[#allocation7 + $0x60] sm:$0xff] }
  0x40   :  { %v937_v39 = vpack.c.bf16 %v99_v37, %v98_v36  ;;  %v279_v41 = vld [vmem:[#allocation7 + $0x58] sm:$0xff]  ;;  %v281_v44 = vld [vmem:[#allocation7 + $0x68] sm:$0xff]  ;;  %v70_v47 = vld [vmem:[#allocation2 + $0x10] sm:$0xff] }
  0x41   :  { %v961_v42 = vpack.c.bf16 %v279_v41, %v278_v40  ;;  %v69_v45 = vld [vmem:[#allocation2 + $0x8] sm:$0xff]  ;;  %v965_v46 = vpack.c.bf16 %v281_v44, %v280_v43  ;;  %v71_v48 = vld [vmem:[#allocation2 + $0x18] sm:$0xff]  ;;  %v72_v49 = vld [vmem:[#allocation2 + $0x20] sm:$0xff] }
  0x42   :  { %920 = vmatpush3.bf16.msra.mxu0 %v917_v8  ;;  %948 = vmatpush3.bf16.msra.mxu1 %v945_v20  ;;  %v73_v50 = vld [vmem:[#allocation2 + $0x28] sm:$0xff]  ;;  %v74_v51 = vld [vmem:[#allocation2 + $0x30] sm:$0xff]  ;;  %v75_v52 = vld [vmem:[#allocation2 + $0x38] sm:$0xff] }
  0x43   :  { %922 = vmatprep.subr.bf16.mxu0 %v921_v12  ;;  %950 = vmatprep.subr.bf16.mxu1 %v949_v26  ;;  %v76_v53 = vld [vmem:[#allocation2 + $0x40] sm:$0xff]  ;;  %v77_v54 = vld [vmem:[#allocation2 + $0x48] sm:$0xff]  ;;  %v78_v55 = vld [vmem:[#allocation2 + $0x50] sm:$0xff] }
  0x44   :  { %v79_v56 = vld [vmem:[#allocation2 + $0x58] sm:$0xff]  ;;  %v80_v57 = vld [vmem:[#allocation2 + $0x60] sm:$0xff]  ;;  %v81_v58 = vld [vmem:[#allocation2 + $0x68] sm:$0xff] }
  0x45   :  { %v82_v59 = vld [vmem:[#allocation2 + $0x70] sm:$0xff]  ;;  %v83_v60 = vld [vmem:[#allocation2 + $0x78] sm:$0xff]  ;;  %v729_v0 = vld [vmem:[%s1479_s2] ss:$0 sm:$0xff] }
  0x46   :  { %924 = vmatpush3.bf16.msra.mxu0 %v921_v12  ;;  %952 = vmatpush3.bf16.msra.mxu1 %v949_v26  ;;  %v282_v61 = vld [vmem:[#allocation7 + $0x70] sm:$0xff]  ;;  %v283_v62 = vld [vmem:[#allocation7 + $0x78] sm:$0xff] }
  0x47   :  { %926 = vmatprep.subr.bf16.mxu0 %v925_v21  ;;  %954 = vmatprep.subr.bf16.mxu1 %v953_v32  ;;  %v969_v63 = vpack.c.bf16 %v283_v62, %v282_v61 }
  0x4a   :  { %928 = vmatpush3.bf16.msra.mxu0 %v925_v21  ;;  %956 = vmatpush3.bf16.msra.mxu1 %v953_v32 }
  0x4b   :  { %930 = vmatprep.subr.bf16.mxu0 %v929_v27  ;;  %958 = vmatprep.subr.bf16.mxu1 %v957_v38 }
  0x4e   :  { %932 = vmatpush3.bf16.msra.mxu0 %v929_v27  ;;  %960 = vmatpush3.bf16.msra.mxu1 %v957_v38 }
  0x4f   :  { %934 = vmatprep.subr.bf16.mxu0 %v933_v33  ;;  %962 = vmatprep.subr.bf16.mxu1 %v961_v42 }
  0x52   :  { %936 = vmatpush3.bf16.msra.mxu0 %v933_v33  ;;  %964 = vmatpush3.bf16.msra.mxu1 %v961_v42 }
  0x53   :  { %938 = vmatprep.subr.bf16.mxu0 %v937_v39  ;;  %966 = vmatprep.subr.bf16.mxu1 %v965_v46 }
  0x56   :  { %940 = vmatpush3.bf16.msra.mxu0 %v937_v39  ;;  %968 = vmatpush3.bf16.msra.mxu1 %v965_v46 }
  0x57   :  { %970 = vmatprep.subr.bf16.mxu1 %v969_v63 }
  0x59   :  { %830 = vmatmul.mubr.f32.vlgmr.msra.gmra.mrb[0].mxu0 %v69_v45 }
  0x5a   :  { %832 = vmatprep.mubr.f32.mxu0 %v70_v47  ;;  %972 = vmatpush3.bf16.msra.mxu1 %v969_v63 }
  0x5d   :  { %833 = vmatmul.mubr.f32.gmra.mrb[2].mxu0 %v71_v48 }
  0x5e   :  { %835 = vmatprep.mubr.f32.mxu0 %v72_v49  ;;  %v436_v49 = vlaneseq }
  0x61   :  { %836 = vmatmul.mubr.f32.gmra.mrb[4].mxu0 %v73_v50  ;;  %v1206_v50 = vand.u32 127, %v436_v49 }
  0x62   :  { %838 = vmatprep.mubr.f32.mxu0 %v74_v51  ;;  %v730_v51 = vld [vmem:[%s1481_s4] ss:$0 sm:$0xff] }
  0x63   :  { %vm438_vm0 = vcmp.lt.s32.totalorder %v1206_v50, 32 }
  0x65   :  { %839 = vmatmul.mubr.f32.gmra.mrb[6].mxu0 %v75_v52 }
  0x66   :  { %841 = vmatprep.mubr.f32.mxu0 %v76_v53 }
  0x69   :  { %842 = vmatmul.mubr.f32.gmra.mrb[8].mxu0 %v77_v54 }
  0x6a   :  { %844 = vmatprep.mubr.f32.mxu0 %v78_v55 }
  0x6d   :  { %845 = vmatmul.mubr.f32.gmra.mrb[10].mxu0 %v79_v56 }
  0x6e   :  { %847 = vmatprep.mubr.f32.mxu0 %v80_v57 }
  0x71   :  { %848 = vmatmul.mubr.f32.gmra.mrb[12].mxu0 %v81_v58 }
  0x72   :  { %850 = vmatprep.mubr.f32.mxu0 %v82_v59 }
  0x75   :  { %851 = vmatmul.mubr.f32.gmra.mrb[14].mxu0 %v83_v60 }
 0x12c   :  { %v831_v1 = vpop.f32.mrb[0].mxu0 }
 0x12d   :  { %v179_v2 = vadd.f32 %v831_v1, %v729_v0  ;;  %v173_v3 = vpop.f32.mrb[1].mxu0 }
 0x12e   :  { %v174_v4 = vadd.f32 %v729_v0, %v173_v3 }
 0x12f   :  { %v253_v7 = vmax.f32 %v179_v2, 0.0 }
 0x130   :  { %v834_v5 = vpop.f32.mrb[2].mxu0  ;;  %v252_v6 = vmax.f32 %v174_v4, 0.0 }
 0x131   :  { %v189_v8 = vadd.f32 %v834_v5, %v729_v0  ;;  %v183_v9 = vpop.f32.mrb[3].mxu0 }
 0x132   :  { %v184_v10 = vadd.f32 %v729_v0, %v183_v9  ;;  %885 = vmatprep.mubr.f32.mxu1 %v252_v6 }
 0x133   :  { %886 = vmatmul.mubr.f32.vlgmr.msra.gmra.mrb[0].mxu1 %v253_v7  ;;  %v255_v13 = vmax.f32 %v189_v8, 0.0 }
 0x134   :  { %v254_v11 = vmax.f32 %v184_v10, 0.0  ;;  %v837_v12 = vpop.f32.mrb[4].mxu0 }
 0x135   :  { %v199_v14 = vadd.f32 %v837_v12, %v729_v0  ;;  %v193_v15 = vpop.f32.mrb[5].mxu0 }
 0x136   :  { %v194_v16 = vadd.f32 %v729_v0, %v193_v15  ;;  %888 = vmatprep.mubr.f32.mxu1 %v254_v11 }
 0x137   :  { %v257_v17 = vmax.f32 %v199_v14, 0.0  ;;  %889 = vmatmul.mubr.f32.gmra.mrb[2].mxu1 %v255_v13 }
 0x138   :  { %v256_v18 = vmax.f32 %v194_v16, 0.0  ;;  %v840_v19 = vpop.f32.mrb[6].mxu0 }
 0x139   :  { %v209_v20 = vadd.f32 %v840_v19, %v729_v0  ;;  %v203_v21 = vpop.f32.mrb[7].mxu0 }
 0x13a   :  { %v204_v22 = vadd.f32 %v729_v0, %v203_v21  ;;  %891 = vmatprep.mubr.f32.mxu1 %v256_v18 }
 0x13b   :  { %v259_v23 = vmax.f32 %v209_v20, 0.0  ;;  %892 = vmatmul.mubr.f32.gmra.mrb[4].mxu1 %v257_v17 }
 0x13c   :  { %v258_v24 = vmax.f32 %v204_v22, 0.0  ;;  %v843_v25 = vpop.f32.mrb[8].mxu0 }
 0x13d   :  { %v219_v26 = vadd.f32 %v843_v25, %v729_v0  ;;  %v213_v27 = vpop.f32.mrb[9].mxu0 }
 0x13e   :  { %v214_v28 = vadd.f32 %v729_v0, %v213_v27  ;;  %894 = vmatprep.mubr.f32.mxu1 %v258_v24 }
 0x13f   :  { %v261_v29 = vmax.f32 %v219_v26, 0.0  ;;  %895 = vmatmul.mubr.f32.gmra.mrb[6].mxu1 %v259_v23 }
 0x140   :  { %v260_v30 = vmax.f32 %v214_v28, 0.0  ;;  %v846_v31 = vpop.f32.mrb[10].mxu0 }
 0x141   :  { %v229_v32 = vadd.f32 %v846_v31, %v729_v0  ;;  %v223_v33 = vpop.f32.mrb[11].mxu0 }
 0x142   :  { %v224_v34 = vadd.f32 %v729_v0, %v223_v33  ;;  %897 = vmatprep.mubr.f32.mxu1 %v260_v30 }
 0x143   :  { %v263_v35 = vmax.f32 %v229_v32, 0.0  ;;  %898 = vmatmul.mubr.f32.gmra.mrb[8].mxu1 %v261_v29 }
 0x144   :  { %v262_v36 = vmax.f32 %v224_v34, 0.0  ;;  %v849_v37 = vpop.f32.mrb[12].mxu0 }
 0x145   :  { %v239_v38 = vadd.f32 %v849_v37, %v729_v0  ;;  %v233_v39 = vpop.f32.mrb[13].mxu0 }
 0x146   :  { %v234_v40 = vadd.f32 %v729_v0, %v233_v39  ;;  %900 = vmatprep.mubr.f32.mxu1 %v262_v36 }
 0x147   :  { %v265_v41 = vmax.f32 %v239_v38, 0.0  ;;  %901 = vmatmul.mubr.f32.gmra.mrb[10].mxu1 %v263_v35 }
 0x148   :  { %v264_v42 = vmax.f32 %v234_v40, 0.0  ;;  %v852_v43 = vpop.f32.mrb[14].mxu0 }
 0x149   :  { %v249_v44 = vadd.f32 %v852_v43, %v729_v0  ;;  %v243_v45 = vpop.f32.mrb[15].mxu0 }
 0x14a   :  { %v244_v46 = vadd.f32 %v729_v0, %v243_v45  ;;  %903 = vmatprep.mubr.f32.mxu1 %v264_v42 }
 0x14b   :  { %v267_v47 = vmax.f32 %v249_v44, 0.0  ;;  %904 = vmatmul.mubr.f32.gmra.mrb[12].mxu1 %v265_v41 }
 0x14c   :  { %v266_v48 = vmax.f32 %v244_v46, 0.0 }
 0x14e   :  { %906 = vmatprep.mubr.f32.mxu1 %v266_v48 }
 0x14f   :  { %907 = vmatmul.mubr.f32.gmra.mrb[14].mxu1 %v267_v47 }
 0x206   :  { %v887_v52 = vpop.f32.mrb[0].mxu1 }
 0x207   :  { %v1212_v53 = vadd.f32 %v887_v52, %v730_v51  ;;  %v357_v54 = vpop.f32.mrb[1].mxu1 }
 0x208   :  { %v1214_v55 = vadd.f32 %v730_v51, %v357_v54 }
 0x209   :  { %v442_v56 = vsel %vm438_vm0, %v1212_v53, 0.0 }
 0x20a   :  { %459 = vadd.xlane.f32.xlu0 %v442_v56  ;;  %v890_v57 = vpop.f32.mrb[2].mxu1  ;;  %v441_v62 = vsel %vm438_vm0, %v1214_v55, 0.0 }
 0x20b   :  { %v1219_v58 = vadd.f32 %v890_v57, %v730_v51  ;;  %v367_v59 = vpop.f32.mrb[3].mxu1 }
 0x20c   :  { %v1221_v60 = vadd.f32 %v730_v51, %v367_v59 }
 0x20d   :  { %v444_v61 = vsel %vm438_vm0, %v1219_v58, 0.0 }
 0x20e   :  { %463 = vadd.xlane.f32.xlu1 %v444_v61  ;;  %v893_v63 = vpop.f32.mrb[4].mxu1  ;;  %457 = vadd.xlane.f32.xlu0 %v441_v62  ;;  %v443_v3 = vsel %vm438_vm0, %v1221_v60, 0.0 }
 0x20f   :  { %v377_v0 = vpop.f32.mrb[5].mxu1  ;;  %v1231_v2 = vadd.f32 %v893_v63, %v730_v51 }
 0x210   :  { %v1229_v1 = vadd.f32 %v730_v51, %v377_v0 }
 0x211   :  { %v446_v9 = vsel %vm438_vm0, %v1231_v2, 0.0 }
 0x212   :  { %v896_v4 = vpop.f32.mrb[6].mxu1  ;;  %461 = vadd.xlane.f32.xlu1 %v443_v3  ;;  %v445_v5 = vsel %vm438_vm0, %v1229_v1, 0.0 }
 0x213   :  { %v387_v6 = vpop.f32.mrb[7].mxu1  ;;  %465 = vadd.xlane.f32.xlu0 %v445_v5  ;;  %v1241_v8 = vadd.f32 %v896_v4, %v730_v51 }
 0x214   :  { %v1239_v7 = vadd.f32 %v730_v51, %v387_v6 }
 0x215   :  { %v448_v15 = vsel %vm438_vm0, %v1241_v8, 0.0 }
 0x216   :  { %v899_v10 = vpop.f32.mrb[8].mxu1  ;;  %467 = vadd.xlane.f32.xlu1 %v446_v9  ;;  %v447_v11 = vsel %vm438_vm0, %v1239_v7, 0.0 }
 0x217   :  { %v397_v12 = vpop.f32.mrb[9].mxu1  ;;  %469 = vadd.xlane.f32.xlu0 %v447_v11  ;;  %v1251_v14 = vadd.f32 %v899_v10, %v730_v51 }
 0x218   :  { %v1249_v13 = vadd.f32 %v730_v51, %v397_v12 }
 0x219   :  { %v450_v21 = vsel %vm438_vm0, %v1251_v14, 0.0 }
 0x21a   :  { %v902_v16 = vpop.f32.mrb[10].mxu1  ;;  %471 = vadd.xlane.f32.xlu1 %v448_v15  ;;  %v449_v17 = vsel %vm438_vm0, %v1249_v13, 0.0 }
 0x21b   :  { %v407_v18 = vpop.f32.mrb[11].mxu1  ;;  %473 = vadd.xlane.f32.xlu0 %v449_v17  ;;  %v1261_v20 = vadd.f32 %v902_v16, %v730_v51 }
 0x21c   :  { %v1259_v19 = vadd.f32 %v730_v51, %v407_v18 }
 0x21d   :  { %v452_v27 = vsel %vm438_vm0, %v1261_v20, 0.0 }
 0x21e   :  { %v905_v22 = vpop.f32.mrb[12].mxu1  ;;  %475 = vadd.xlane.f32.xlu1 %v450_v21  ;;  %v451_v23 = vsel %vm438_vm0, %v1259_v19, 0.0 }
 0x21f   :  { %v417_v24 = vpop.f32.mrb[13].mxu1  ;;  %477 = vadd.xlane.f32.xlu0 %v451_v23  ;;  %v1271_v26 = vadd.f32 %v905_v22, %v730_v51 }
 0x220   :  { %v1269_v25 = vadd.f32 %v730_v51, %v417_v24 }
 0x221   :  { %v454_v33 = vsel %vm438_vm0, %v1271_v26, 0.0 }
 0x222   :  { %v908_v28 = vpop.f32.mrb[14].mxu1  ;;  %479 = vadd.xlane.f32.xlu1 %v452_v27  ;;  %v453_v29 = vsel %vm438_vm0, %v1269_v25, 0.0 }
 0x223   :  { %v427_v30 = vpop.f32.mrb[15].mxu1  ;;  %481 = vadd.xlane.f32.xlu0 %v453_v29  ;;  %v1281_v32 = vadd.f32 %v908_v28, %v730_v51 }
 0x224   :  { %v1279_v31 = vadd.f32 %v730_v51, %v427_v30 }
 0x225   :  { %v456_v35 = vsel %vm438_vm0, %v1281_v32, 0.0 }
 0x226   :  { %483 = vadd.xlane.f32.xlu1 %v454_v33  ;;  %v455_v34 = vsel %vm438_vm0, %v1279_v31, 0.0 }
 0x227   :  { %485 = vadd.xlane.f32.xlu0 %v455_v34 }
 0x22a   :  { %487 = vadd.xlane.f32.xlu1 %v456_v35 }
 0x297   :  { %v460_v36 = vpop.xlane.xlu0 %459 }
 0x298   :  { %v490_v37 = vmul.f32 0.03125, %v460_v36 }
 0x29a   :  { %v506_v38 = vsub.f32 %v1212_v53, %v490_v37 }
 0x29b   :  { %v464_v39 = vpop.xlane.xlu1 %463  ;;  %v458_v40 = vpop.xlane.xlu0 %457 }
 0x29c   :  { %v492_v41 = vmul.f32 0.03125, %v464_v39  ;;  %v489_v42 = vmul.f32 0.03125, %v458_v40  ;;  %v1295_v43 = vsel %vm438_vm0, %v506_v38, 0.0 }
 0x29d   :  { %v538_v44 = vmul.f32 %v1295_v43, %v1295_v43 }
 0x29e   :  { %v508_v45 = vsub.f32 %v1219_v58, %v492_v41  ;;  %v505_v46 = vsub.f32 %v1214_v55, %v489_v42 }
 0x29f   :  { %555 = vadd.xlane.f32.xlu1 %v538_v44  ;;  %v462_v47 = vpop.xlane.xlu1 %461 }
 0x2a0   :  { %v491_v48 = vmul.f32 0.03125, %v462_v47  ;;  %v466_v49 = vpop.xlane.xlu0 %465  ;;  %v1303_v51 = vsel %vm438_vm0, %v508_v45, 0.0  ;;  %v1307_v52 = vsel %vm438_vm0, %v505_v46, 0.0 }
 0x2a1   :  { %v493_v53 = vmul.f32 0.03125, %v466_v49  ;;  %v540_v54 = vmul.f32 %v1303_v51, %v1303_v51  ;;  %v537_v56 = vmul.f32 %v1307_v52, %v1307_v52 }
 0x2a2   :  { %v507_v55 = vsub.f32 %v1221_v60, %v491_v48 }
 0x2a3   :  { %v509_v57 = vsub.f32 %v1229_v1, %v493_v53  ;;  %559 = vadd.xlane.f32.xlu1 %v540_v54  ;;  %v468_v58 = vpop.xlane.xlu1 %467  ;;  %553 = vadd.xlane.f32.xlu0 %v537_v56 }
 0x2a4   :  { %v494_v59 = vmul.f32 0.03125, %v468_v58  ;;  %v470_v61 = vpop.xlane.xlu0 %469  ;;  %v1317_v62 = vsel %vm438_vm0, %v507_v55, 0.0 }
 0x2a5   :  { %v495_v63 = vmul.f32 0.03125, %v470_v61  ;;  %v539_v0 = vmul.f32 %v1317_v62, %v1317_v62  ;;  %v1324_v60 = vsel %vm438_vm0, %v509_v57, 0.0 }
 0x2a6   :  { %v510_v3 = vsub.f32 %v1231_v2, %v494_v59  ;;  %v541_v2 = vmul.f32 %v1324_v60, %v1324_v60 }
 0x2a7   :  { %v511_v1 = vsub.f32 %v1239_v7, %v495_v63  ;;  %v472_v4 = vpop.xlane.xlu1 %471  ;;  %557 = vadd.xlane.f32.xlu0 %v539_v0 }
 0x2a8   :  { %v496_v5 = vmul.f32 0.03125, %v472_v4  ;;  %v474_v6 = vpop.xlane.xlu0 %473  ;;  %v1329_v9 = vsel %vm438_vm0, %v510_v3, 0.0 }
 0x2a9   :  { %v497_v10 = vmul.f32 0.03125, %v474_v6  ;;  %v542_v11 = vmul.f32 %v1329_v9, %v1329_v9  ;;  %v1338_v7 = vsel %vm438_vm0, %v511_v1, 0.0 }
 0x2aa   :  { %v512_v12 = vsub.f32 %v1241_v8, %v496_v5  ;;  %v543_v8 = vmul.f32 %v1338_v7, %v1338_v7 }
 0x2ab   :  { %v513_v15 = vsub.f32 %v1249_v13, %v497_v10  ;;  %563 = vadd.xlane.f32.xlu1 %v542_v11  ;;  %v476_v16 = vpop.xlane.xlu1 %475  ;;  %561 = vadd.xlane.f32.xlu0 %v541_v2 }
 0x2ac   :  { %v498_v17 = vmul.f32 0.03125, %v476_v16  ;;  %v478_v18 = vpop.xlane.xlu0 %477  ;;  %v1343_v21 = vsel %vm438_vm0, %v512_v12, 0.0  ;;  %v1407_v16 = vld [vmem:[%s1482_s5] ss:$0 sm:$0xff]  ;;  %s1110_s5 = smov [#allocation8]  }
 0x2ad   :  { %v499_v22 = vmul.f32 0.03125, %v478_v18  ;;  %v544_v23 = vmul.f32 %v1343_v21, %v1343_v21  ;;  %v1352_v13 = vsel %vm438_vm0, %v513_v15, 0.0 }
 0x2ae   :  { %v514_v24 = vsub.f32 %v1251_v14, %v498_v17  ;;  %v545_v14 = vmul.f32 %v1352_v13, %v1352_v13 }
 0x2af   :  { %v515_v27 = vsub.f32 %v1259_v19, %v499_v22  ;;  %567 = vadd.xlane.f32.xlu1 %v544_v23  ;;  %v480_v28 = vpop.xlane.xlu1 %479  ;;  %565 = vadd.xlane.f32.xlu0 %v543_v8 }
 0x2b0   :  { %v500_v29 = vmul.f32 0.03125, %v480_v28  ;;  %v482_v30 = vpop.xlane.xlu0 %481  ;;  %v1357_v33 = vsel %vm438_vm0, %v514_v24, 0.0  ;;  %v1413_v24 = vld [vmem:[%s1483_s6] ss:$0 sm:$0xff]  ;;  %s716_s6 = sshll.u32 %s1110_s5, 4  ;;  %s717_s6 = int_to_ptr.vmem [resolvable:$true] %s716_s6 }
 0x2b1   :  { %v501_v34 = vmul.f32 0.03125, %v482_v30  ;;  %v546_v35 = vmul.f32 %v1357_v33, %v1357_v33  ;;  %v1366_v19 = vsel %vm438_vm0, %v515_v27, 0.0  ;;  %s1077_s21 = scalar_lea.vmem %s717_s6, 2048  ;;  %p1082_p11 = scmp.lt.s32.totalorder %s717_s6, %s717_s6 }
 0x2b2   :  { %v516_v36 = vsub.f32 %v1261_v20, %v500_v29  ;;  %v547_v20 = vmul.f32 %v1366_v19, %v1366_v19  ;;  %p1078_p10 = scmp.ne.s32.totalorder %s717_s6, %s1077_s21  ;;  %p1083_p12 = scmp.lt.s32.totalorder %s1077_s21, %s1077_s21 }
 0x2b3   :  { %v517_v37 = vsub.f32 %v1269_v25, %v501_v34  ;;  %571 = vadd.xlane.f32.xlu1 %v546_v35  ;;  %v484_v38 = vpop.xlane.xlu1 %483  ;;  %569 = vadd.xlane.f32.xlu0 %v545_v14 }
 0x2b4   :  { %v502_v39 = vmul.f32 0.03125, %v484_v38  ;;  %v486_v40 = vpop.xlane.xlu0 %485  ;;  %v1371_v41 = vsel %vm438_vm0, %v516_v36, 0.0  ;;  %p1084_p13 = por %p1083_p12, %p1082_p11 }
 0x2b5   :  { %v503_v42 = vmul.f32 0.03125, %v486_v40  ;;  %v548_v44 = vmul.f32 %v1371_v41, %v1371_v41  ;;  %v1380_v25 = vsel %vm438_vm0, %v517_v37, 0.0 }
 0x2b6   :  { %v518_v45 = vsub.f32 %v1271_v26, %v502_v39  ;;  %v549_v26 = vmul.f32 %v1380_v25, %v1380_v25  ;;  %p1085_p0 = pnand %p1084_p13, %p1078_p10 }
 0x2b7   :  { %v519_v46 = vsub.f32 %v1279_v31, %v503_v42  ;;  %575 = vadd.xlane.f32.xlu1 %v548_v44  ;;  %v488_v47 = vpop.xlane.xlu1 %487  ;;  %573 = vadd.xlane.f32.xlu0 %v547_v20 }
 0x2b8   :  { %v504_v48 = vmul.f32 0.03125, %v488_v47  ;;  %v1385_v49 = vsel %vm438_vm0, %v518_v45, 0.0 }
 0x2b9   :  { %v550_v53 = vmul.f32 %v1385_v49, %v1385_v49  ;;  %v1394_v56 = vsel %vm438_vm0, %v519_v46, 0.0 }
 0x2ba   :  { %v520_v54 = vsub.f32 %v1281_v32, %v504_v48  ;;  %v551_v57 = vmul.f32 %v1394_v56, %v1394_v56 }
 0x2bb   :  { %579 = vadd.xlane.f32.xlu1 %v550_v53  ;;  %577 = vadd.xlane.f32.xlu0 %v549_v26 }
 0x2bc   :  { %v1398_v31 = vsel %vm438_vm0, %v520_v54, 0.0 }
 0x2bd   :  { %v552_v55 = vmul.f32 %v1398_v31, %v1398_v31 }
 0x2bf   :  { %583 = vadd.xlane.f32.xlu1 %v552_v55  ;;  %581 = vadd.xlane.f32.xlu0 %v551_v57 }
 0x32c   :  { %v556_v58 = vpop.xlane.xlu1 %555 }
 0x32d   :  { %v586_v32 = vmul.f32 0.03125, %v556_v58 }
 0x32f   :  { %v602_v59 = vadd.f32 1e-05, %v586_v32 }
 0x330   :  { %v560_v61 = vpop.xlane.xlu1 %559  ;;  %v554_v63 = vpop.xlane.xlu0 %553 }
 0x331   :  { %979 = vrsqrt.f32 %v602_v59  ;;  %v588_v0 = vmul.f32 0.03125, %v560_v61  ;;  %v585_v3 = vmul.f32 0.03125, %v554_v63 }
 0x333   :  { %v604_v1 = vadd.f32 1e-05, %v588_v0  ;;  %v601_v50 = vadd.f32 1e-05, %v585_v3 }
 0x334   :  { %v558_v4 = vpop.xlane.xlu0 %557 }
 0x335   :  { %981 = vrsqrt.f32 %v604_v1  ;;  %v587_v5 = vmul.f32 0.03125, %v558_v4 }
 0x336   :  { %983 = vrsqrt.f32 %v601_v50 }
 0x337   :  { %v603_v6 = vadd.f32 1e-05, %v587_v5 }
 0x338   :  { %v564_v10 = vpop.xlane.xlu1 %563  ;;  %v562_v11 = vpop.xlane.xlu0 %561 }
 0x339   :  { %985 = vrsqrt.f32 %v603_v6  ;;  %v590_v2 = vmul.f32 0.03125, %v564_v10  ;;  %v589_v12 = vmul.f32 0.03125, %v562_v11 }
 0x33b   :  { %v980_v15 = vpop.eup %979  ;;  %v606_v17 = vadd.f32 1e-05, %v590_v2  ;;  %v605_v18 = vadd.f32 1e-05, %v589_v12 }
 0x33c   :  { %v634_v22 = vmul.f32 %v980_v15, %v1295_v43  ;;  %v568_v23 = vpop.xlane.xlu1 %567  ;;  %v566_v8 = vpop.xlane.xlu0 %565 }
 0x33d   :  { %987 = vrsqrt.f32 %v606_v17  ;;  %v592_v27 = vmul.f32 0.03125, %v568_v23  ;;  %v591_v28 = vmul.f32 0.03125, %v566_v8 }
 0x33e   :  { %v657_v29 = vmul.f32 %v1407_v16, %v634_v22  ;;  %989 = vrsqrt.f32 %v605_v18 }
 0x33f   :  { %v982_v30 = vpop.eup %981  ;;  %v608_v34 = vadd.f32 1e-05, %v592_v27  ;;  %v607_v35 = vadd.f32 1e-05, %v591_v28 }
 0x340   :  { %v984_v14 = vpop.eup %983  ;;  %v680_v36 = vadd.f32 %v1413_v24, %v657_v29  ;;  %v636_v43 = vmul.f32 %v982_v30, %v1303_v51  ;;  %v572_v37 = vpop.xlane.xlu1 %571 }
 0x341   :  { %v570_v38 = vpop.xlane.xlu0 %569  ;;  %v633_v39 = vmul.f32 %v984_v14, %v1307_v52  ;;  %991 = vrsqrt.f32 %v608_v34  ;;  %v594_v40 = vmul.f32 0.03125, %v572_v37 }
 0x342   :  { %v593_v42 = vmul.f32 0.03125, %v570_v38  ;;  %696 = vst [vmem:[#allocation8 + $0x8] sm:$0xff] %v680_v36  ;;  %v659_v44 = vmul.f32 %v1407_v16, %v636_v43  ;;  %993 = vrsqrt.f32 %v607_v35 }
 0x343   :  { %v986_v20 = vpop.eup %985  ;;  %v656_v45 = vmul.f32 %v1407_v16, %v633_v39  ;;  %v610_v46 = vadd.f32 1e-05, %v594_v40 }
 0x344   :  { %v609_v47 = vadd.f32 1e-05, %v593_v42  ;;  %v682_v48 = vadd.f32 %v1413_v24, %v659_v44  ;;  %v635_v51 = vmul.f32 %v986_v20, %v1317_v62  ;;  %v576_v53 = vpop.xlane.xlu1 %575 }
 0x345   :  { %v574_v26 = vpop.xlane.xlu0 %573  ;;  %v679_v52 = vadd.f32 %v1413_v24, %v656_v45  ;;  %995 = vrsqrt.f32 %v610_v46  ;;  %v596_v54 = vmul.f32 0.03125, %v576_v53 }
 0x346   :  { %v595_v55 = vmul.f32 0.03125, %v574_v26  ;;  %698 = vst [vmem:[#allocation8 + $0x18] sm:$0xff] %v682_v48  ;;  %v658_v57 = vmul.f32 %v1407_v16, %v635_v51  ;;  %997 = vrsqrt.f32 %v609_v47 }
 0x347   :  { %v988_v58 = vpop.eup %987  ;;  %695 = vst [vmem:[#allocation8] sm:$0xff] %v679_v52  ;;  %v612_v32 = vadd.f32 1e-05, %v596_v54 }
 0x348   :  { %v611_v59 = vadd.f32 1e-05, %v595_v55  ;;  %v990_v61 = vpop.eup %989  ;;  %v681_v63 = vadd.f32 %v1413_v24, %v658_v57  ;;  %v638_v62 = vmul.f32 %v988_v58, %v1329_v9  ;;  %v580_v0 = vpop.xlane.xlu1 %579 }
 0x349   :  { %v578_v3 = vpop.xlane.xlu0 %577  ;;  %v637_v1 = vmul.f32 %v990_v61, %v1324_v60  ;;  %999 = vrsqrt.f32 %v612_v32  ;;  %v598_v50 = vmul.f32 0.03125, %v580_v0 }
 0x34a   :  { %v597_v4 = vmul.f32 0.03125, %v578_v3  ;;  %697 = vst [vmem:[#allocation8 + $0x10] sm:$0xff] %v681_v63  ;;  %v661_v5 = vmul.f32 %v1407_v16, %v638_v62  ;;  %1001 = vrsqrt.f32 %v611_v59 }
 0x34b   :  { %v992_v6 = vpop.eup %991  ;;  %v660_v10 = vmul.f32 %v1407_v16, %v637_v1  ;;  %v614_v11 = vadd.f32 1e-05, %v598_v50 }
 0x34c   :  { %v613_v2 = vadd.f32 1e-05, %v597_v4  ;;  %v994_v12 = vpop.eup %993  ;;  %v684_v15 = vadd.f32 %v1413_v24, %v661_v5  ;;  %v640_v9 = vmul.f32 %v992_v6, %v1343_v21  ;;  %v584_v17 = vpop.xlane.xlu1 %583 }
 0x34d   :  { %v582_v18 = vpop.xlane.xlu0 %581  ;;  %v683_v60 = vadd.f32 %v1413_v24, %v660_v10  ;;  %v639_v22 = vmul.f32 %v994_v12, %v1338_v7  ;;  %1003 = vrsqrt.f32 %v614_v11  ;;  %v600_v23 = vmul.f32 0.03125, %v584_v17 }
 0x34e   :  { %700 = vst [vmem:[#allocation8 + $0x28] sm:$0xff] %v684_v15  ;;  %v663_v8 = vmul.f32 %v1407_v16, %v640_v9  ;;  %1005 = vrsqrt.f32 %v613_v2  ;;  %v599_v27 = vmul.f32 0.03125, %v582_v18 }
 0x34f   :  { %v996_v28 = vpop.eup %995  ;;  %699 = vst [vmem:[#allocation8 + $0x20] sm:$0xff] %v683_v60  ;;  %v662_v29 = vmul.f32 %v1407_v16, %v639_v22  ;;  %v616_v30 = vadd.f32 1e-05, %v600_v23 }
 0x350   :  { %v998_v34 = vpop.eup %997  ;;  %v686_v21 = vadd.f32 %v1413_v24, %v663_v8  ;;  %v642_v35 = vmul.f32 %v996_v28, %v1357_v33  ;;  %v615_v14 = vadd.f32 1e-05, %v599_v27 }
 0x351   :  { %v685_v7 = vadd.f32 %v1413_v24, %v662_v29  ;;  %v641_v36 = vmul.f32 %v998_v34, %v1352_v13  ;;  %1007 = vrsqrt.f32 %v616_v30 }
 0x352   :  { %702 = vst [vmem:[#allocation8 + $0x38] sm:$0xff] %v686_v21  ;;  %v665_v43 = vmul.f32 %v1407_v16, %v642_v35  ;;  %1009 = vrsqrt.f32 %v615_v14 }
 0x353   :  { %v1000_v37 = vpop.eup %999  ;;  %701 = vst [vmem:[#allocation8 + $0x30] sm:$0xff] %v685_v7  ;;  %v664_v38 = vmul.f32 %v1407_v16, %v641_v36 }
 0x354   :  { %v1002_v39 = vpop.eup %1001  ;;  %v688_v40 = vadd.f32 %v1413_v24, %v665_v43  ;;  %v644_v42 = vmul.f32 %v1000_v37, %v1371_v41 }
 0x355   :  { %v687_v33 = vadd.f32 %v1413_v24, %v664_v38  ;;  %v643_v44 = vmul.f32 %v1002_v39, %v1366_v19 }
 0x356   :  { %704 = vst [vmem:[#allocation8 + $0x48] sm:$0xff] %v688_v40  ;;  %v667_v13 = vmul.f32 %v1407_v16, %v644_v42 }
 0x357   :  { %v1004_v20 = vpop.eup %1003  ;;  %703 = vst [vmem:[#allocation8 + $0x40] sm:$0xff] %v687_v33  ;;  %v666_v45 = vmul.f32 %v1407_v16, %v643_v44 }
 0x358   :  { %v1006_v46 = vpop.eup %1005  ;;  %v690_v47 = vadd.f32 %v1413_v24, %v667_v13  ;;  %v646_v48 = vmul.f32 %v1004_v20, %v1385_v49 }
 0x359   :  { %v689_v51 = vadd.f32 %v1413_v24, %v666_v45  ;;  %v645_v41 = vmul.f32 %v1006_v46, %v1380_v25 }
 0x35a   :  { %706 = vst [vmem:[#allocation8 + $0x58] sm:$0xff] %v690_v47  ;;  %v669_v53 = vmul.f32 %v1407_v16, %v646_v48 }
 0x35b   :  { %v1008_v19 = vpop.eup %1007  ;;  %705 = vst [vmem:[#allocation8 + $0x50] sm:$0xff] %v689_v51  ;;  %v668_v26 = vmul.f32 %v1407_v16, %v645_v41 }
 0x35c   :  { %v1010_v52 = vpop.eup %1009  ;;  %v692_v54 = vadd.f32 %v1413_v24, %v669_v53  ;;  %v648_v55 = vmul.f32 %v1008_v19, %v1398_v31 }
 0x35d   :  { %v691_v57 = vadd.f32 %v1413_v24, %v668_v26  ;;  %v647_v49 = vmul.f32 %v1010_v52, %v1394_v56 }
 0x35e   :  { %708 = vst [vmem:[#allocation8 + $0x68] sm:$0xff] %v692_v54  ;;  %v671_v58 = vmul.f32 %v1407_v16, %v648_v55 }
 0x35f   :  { %707 = vst [vmem:[#allocation8 + $0x60] sm:$0xff] %v691_v57  ;;  %v670_v25 = vmul.f32 %v1407_v16, %v647_v49 }
 0x360   :  { %v694_v32 = vadd.f32 %v1413_v24, %v671_v58 }
 0x361   :  { %v693_v59 = vadd.f32 %v1413_v24, %v670_v25 }
 0x362   :  { %710 = vst [vmem:[#allocation8 + $0x78] sm:$0xff] %v694_v32 }
 0x363   :  { %709 = vst [vmem:[#allocation8 + $0x70] sm:$0xff] %v693_v59 }
 0x364   :  { %1088 = shalt.err (!%p1085_p0)
}
 0x365   :  { %s1089_s24 = scalar_lea.hbm %s1484_s7, 2048 }
 0x366   :  { %p1090_p1 = scmp.ne.s32.totalorder %s1484_s7, %s1089_s24  ;;  %p1093_p2 = scmp.lt.u32.totalorder %s1089_s24, %s1484_s7 }
 0x368   :  { %p1095_p3 = pnand %p1093_p2, %p1090_p1 }
 0x36a   :  { %1098 = shalt.err (!%p1095_p3)
}
 0x36b   :  { %722 = dma.vmem_to_hbm [thread:$0]  %s717_s6, 2048, %s1484_s7, [#allocation4], %s1107_s13, %s1107_s13, %s1108_s14  }
 0x36c   :  { %1103 = dma.done.wait [#allocation4], 2048  }
 0x36d   :  { %1104 = vsyncadd [#allocation4], 4294965248 }
 0x36e   :  { %726 = vsyncpa [#allocation3], 1 }
 0x36f   :  { %727 = vsyncpa [#allocation6], 1 }
 0x370   :  { %728 = vsyncpa [#allocation4], 1 }

// kernel: tpu_custom_call.1
= control target key start
LH: loop header
LB: loop body
LE: loop exit
PB: predicated region body
PF: predicated region fallthrough
CT: control target
= control target key end

     0   :  { %12 = vsyncpa [#allocation3], 0  ;;  %s1477_s0 = inlined_call_operand.hbm [shape: f32[128,128], index: 0, kind: input, shape index: {}]   ;;  %s1478_s1 = inlined_call_operand.hbm [shape: f32[128,128], index: 1, kind: input, shape index: {}]   ;;  %s1479_s2 = inlined_call_operand.vmem [shape: f32[1,128], index: 2, kind: input, shape index: {}]   ;;  %s1480_s3 = inlined_call_operand.hbm [shape: f32[128,128], index: 3, kind: input, shape index: {}]   ;;  %s1481_s4 = inlined_call_operand.vmem [shape: f32[1,128], index: 4, kind: input, shape index: {}]   ;;  %s1482_s5 = inlined_call_operand.vmem [shape: f32[1,128], index: 5, kind: input, shape index: {}]   ;;  %s1483_s6 = inlined_call_operand.vmem [shape: f32[1,128], index: 6, kind: input, shape index: {}]   ;;  %s1484_s7 = inlined_call_operand.hbm [shape: f32[128,128], index: 7, kind: output, shape index: {}]  }
   0x1   :  { %13 = vsyncpa [#allocation6], 0 }
   0x2   :  { %14 = vsyncpa [#allocation4], 0  ;;  %s1105_s24 = smov [#allocation5]   ;;  %s1106_s26 = smov [#allocation2]  }
   0x3   :  { %s32_s25 = sshll.u32 %s1105_s24, 4  ;;  %s20_s27 = sshll.u32 %s1106_s26, 4  ;;  %s33_s25 = int_to_ptr.vmem [resolvable:$true] %s32_s25  ;;  %s1151_s27 = int_to_ptr.vmem [resolvable:$true] %s20_s27 }
   0x4   :  { %s1011_s30 = scalar_lea.hbm %s1478_s1, 2048 }
   0x5   :  { %p1012_p0 = scmp.ne.s32.totalorder %s1478_s1, %s1011_s30  ;;  %p1015_p1 = scmp.lt.u32.totalorder %s1011_s30, %s1478_s1 }
   0x7   :  { %p1017_p2 = pnand %p1015_p1, %p1012_p0 }
   0x9   :  { %1020 = shalt.err (!%p1017_p2)
}
   0xa   :  { %s1021_s12 = scalar_lea.vmem %s33_s25, 2048  ;;  %p1026_p4 = scmp.lt.s32.totalorder %s33_s25, %s33_s25 }
   0xb   :  { %p1022_p3 = scmp.ne.s32.totalorder %s33_s25, %s1021_s12  ;;  %p1027_p5 = scmp.lt.s32.totalorder %s1021_s12, %s1021_s12 }
   0xd   :  { %p1028_p6 = por %p1027_p5, %p1026_p4 }
   0xf   :  { %p1029_p7 = pnand %p1028_p6, %p1022_p3 }
  0x11   :  { %1032 = shalt.err (!%p1029_p7)
}
  0x12   :  { %s1107_s13 = smov 128   ;;  %s1108_s14 = smov 8  }
  0x13   :  { %38 = dma.hbm_to_vmem [thread:$0]  %s1478_s1, 2048, %s33_s25, [#allocation6], %s1107_s13, %s1107_s13, %s1108_s14  }
  0x14   :  { %s1033_s19 = scalar_lea.hbm %s1477_s0, 2048 }
  0x15   :  { %p1034_p8 = scmp.ne.s32.totalorder %s1477_s0, %s1033_s19  ;;  %p1037_p9 = scmp.lt.u32.totalorder %s1033_s19, %s1477_s0 }
  0x17   :  { %p1039_p10 = pnand %p1037_p9, %p1034_p8 }
  0x19   :  { %1042 = shalt.err (!%p1039_p10)
}
  0x1a   :  { %s1043_s24 = scalar_lea.vmem %s1151_s27, 2048  ;;  %p1048_p12 = scmp.lt.s32.totalorder %s1151_s27, %s1151_s27 }
  0x1b   :  { %p1044_p11 = scmp.ne.s32.totalorder %s1151_s27, %s1043_s24  ;;  %p1049_p13 = scmp.lt.s32.totalorder %s1043_s24, %s1043_s24 }
  0x1d   :  { %p1050_p0 = por %p1049_p13, %p1048_p12 }
  0x1f   :  { %p1051_p1 = pnand %p1050_p0, %p1044_p11 }
  0x21   :  { %1054 = shalt.err (!%p1051_p1)
}
  0x22   :  { %26 = dma.hbm_to_vmem [thread:$0]  %s1477_s0, 2048, %s1151_s27, [#allocation3], %s1107_s13, %s1107_s13, %s1108_s14  }
  0x23   :  { %s1109_s26 = smov [#allocation7]   ;;  %s1055_s8 = scalar_lea.hbm %s1480_s3, 2048 }
  0x24   :  { %s46_s28 = sshll.u32 %s1109_s26, 4  ;;  %p1056_p2 = scmp.ne.s32.totalorder %s1480_s3, %s1055_s8  ;;  %s47_s28 = int_to_ptr.vmem [resolvable:$true] %s46_s28 }
  0x25   :  { %p1059_p3 = scmp.lt.u32.totalorder %s1055_s8, %s1480_s3 }
  0x27   :  { %p1061_p4 = pnand %p1059_p3, %p1056_p2 }
  0x29   :  { %1064 = shalt.err (!%p1061_p4)
}
  0x2a   :  { %s1065_s15 = scalar_lea.vmem %s47_s28, 2048  ;;  %p1070_p6 = scmp.lt.s32.totalorder %s47_s28, %s47_s28 }
  0x2b   :  { %p1066_p5 = scmp.ne.s32.totalorder %s47_s28, %s1065_s15  ;;  %p1071_p7 = scmp.lt.s32.totalorder %s1065_s15, %s1065_s15 }
  0x2d   :  { %p1072_p8 = por %p1071_p7, %p1070_p6 }
  0x2f   :  { %p1073_p9 = pnand %p1072_p8, %p1066_p5 }
  0x31   :  { %1076 = shalt.err (!%p1073_p9)
}
  0x32   :  { %52 = dma.hbm_to_vmem [thread:$0]  %s1480_s3, 2048, %s47_s28, [#allocation6], %s1107_s13, %s1107_s13, %s1108_s14  }
  0x33   :  { %1099 = dma.done.wait [#allocation3], 2048  }
  0x34   :  { %1100 = vsyncadd [#allocation3], 4294965248 }
  0x35   :  { %1101 = dma.done.wait [#allocation6], 4096  }
  0x36   :  { %1102 = vsyncadd [#allocation6], 4294963200  ;;  %v84_v0 = vld [vmem:[#allocation5] sm:$0xff]  ;;  %v85_v1 = vld [vmem:[#allocation5 + $0x8] sm:$0xff] }
  0x37   :  { %v86_v2 = vld [vmem:[#allocation5 + $0x10] sm:$0xff]  ;;  %v909_v3 = vpack.c.bf16 %v85_v1, %v84_v0  ;;  %v87_v4 = vld [vmem:[#allocation5 + $0x18] sm:$0xff]  ;;  %v88_v6 = vld [vmem:[#allocation5 + $0x20] sm:$0xff] }
  0x38   :  { %v913_v5 = vpack.c.bf16 %v87_v4, %v86_v2  ;;  %v89_v7 = vld [vmem:[#allocation5 + $0x28] sm:$0xff]  ;;  %v68_v9 = vld [vmem:[#allocation2] sm:$0xff]  ;;  %v90_v10 = vld [vmem:[#allocation5 + $0x30] sm:$0xff] }
  0x39   :  { %910 = vmatprep.subr.bf16.mxu0 %v909_v3  ;;  %v917_v8 = vpack.c.bf16 %v89_v7, %v88_v6  ;;  %v91_v11 = vld [vmem:[#allocation5 + $0x38] sm:$0xff]  ;;  %829 = vmatprep.mubr.f32.mxu0 %v68_v9  ;;  %v92_v13 = vld [vmem:[#allocation5 + $0x40] sm:$0xff]  ;;  %v93_v14 = vld [vmem:[#allocation5 + $0x48] sm:$0xff] }
  0x3a   :  { %912 = vmatpush3.bf16.msra.mxu0 %v909_v3  ;;  %v921_v12 = vpack.c.bf16 %v91_v11, %v90_v10  ;;  %v268_v15 = vld [vmem:[#allocation7] sm:$0xff]  ;;  %v269_v16 = vld [vmem:[#allocation7 + $0x8] sm:$0xff]  ;;  %v270_v17 = vld [vmem:[#allocation7 + $0x10] sm:$0xff]  ;;  %v925_v21 = vpack.c.bf16 %v93_v14, %v92_v13 }
  0x3b   :  { %914 = vmatprep.subr.bf16.mxu0 %v913_v5  ;;  %v271_v18 = vld [vmem:[#allocation7 + $0x18] sm:$0xff]  ;;  %v941_v19 = vpack.c.bf16 %v269_v16, %v268_v15  ;;  %v272_v22 = vld [vmem:[#allocation7 + $0x20] sm:$0xff]  ;;  %v273_v23 = vld [vmem:[#allocation7 + $0x28] sm:$0xff] }
  0x3c   :  { %v945_v20 = vpack.c.bf16 %v271_v18, %v270_v17  ;;  %v94_v24 = vld [vmem:[#allocation5 + $0x50] sm:$0xff]  ;;  %v95_v25 = vld [vmem:[#allocation5 + $0x58] sm:$0xff]  ;;  %v949_v26 = vpack.c.bf16 %v273_v23, %v272_v22  ;;  %v96_v30 = vld [vmem:[#allocation5 + $0x60] sm:$0xff] }
  0x3d   :  { %942 = vmatprep.subr.bf16.mxu1 %v941_v19  ;;  %v929_v27 = vpack.c.bf16 %v95_v25, %v94_v24  ;;  %v274_v28 = vld [vmem:[#allocation7 + $0x30] sm:$0xff]  ;;  %v275_v29 = vld [vmem:[#allocation7 + $0x38] sm:$0xff]  ;;  %v97_v31 = vld [vmem:[#allocation5 + $0x68] sm:$0xff] }
  0x3e   :  { %916 = vmatpush3.bf16.msra.mxu0 %v913_v5  ;;  %944 = vmatpush3.bf16.msra.mxu1 %v941_v19  ;;  %v953_v32 = vpack.c.bf16 %v275_v29, %v274_v28  ;;  %v933_v33 = vpack.c.bf16 %v97_v31, %v96_v30  ;;  %v276_v34 = vld [vmem:[#allocation7 + $0x40] sm:$0xff]  ;;  %v277_v35 = vld [vmem:[#allocation7 + $0x48] sm:$0xff]  ;;  %v98_v36 = vld [vmem:[#allocation5 + $0x70] sm:$0xff] }
  0x3f   :  { %918 = vmatprep.subr.bf16.mxu0 %v917_v8  ;;  %946 = vmatprep.subr.bf16.mxu1 %v945_v20  ;;  %v99_v37 = vld [vmem:[#allocation5 + $0x78] sm:$0xff]  ;;  %v957_v38 = vpack.c.bf16 %v277_v35, %v276_v34  ;;  %v278_v40 = vld [vmem:[#allocation7 + $0x50] sm:$0xff]  ;;  %v280_v43 = vld [vmem:[#allocation7 + $0x60] sm:$0xff] }
  0x40   :  { %v937_v39 = vpack.c.bf16 %v99_v37, %v98_v36  ;;  %v279_v41 = vld [vmem:[#allocation7 + $0x58] sm:$0xff]  ;;  %v281_v44 = vld [vmem:[#allocation7 + $0x68] sm:$0xff]  ;;  %v70_v47 = vld [vmem:[#allocation2 + $0x10] sm:$0xff] }
  0x41   :  { %v961_v42 = vpack.c.bf16 %v279_v41, %v278_v40  ;;  %v69_v45 = vld [vmem:[#allocation2 + $0x8] sm:$0xff]  ;;  %v965_v46 = vpack.c.bf16 %v281_v44, %v280_v43  ;;  %v71_v48 = vld [vmem:[#allocation2 + $0x18] sm:$0xff]  ;;  %v72_v49 = vld [vmem:[#allocation2 + $0x20] sm:$0xff] }
  0x42   :  { %920 = vmatpush3.bf16.msra.mxu0 %v917_v8  ;;  %948 = vmatpush3.bf16.msra.mxu1 %v945_v20  ;;  %v73_v50 = vld [vmem:[#allocation2 + $0x28] sm:$0xff]  ;;  %v74_v51 = vld [vmem:[#allocation2 + $0x30] sm:$0xff]  ;;  %v75_v52 = vld [vmem:[#allocation2 + $0x38] sm:$0xff] }
  0x43   :  { %922 = vmatprep.subr.bf16.mxu0 %v921_v12  ;;  %950 = vmatprep.subr.bf16.mxu1 %v949_v26  ;;  %v76_v53 = vld [vmem:[#allocation2 + $0x40] sm:$0xff]  ;;  %v77_v54 = vld [vmem:[#allocation2 + $0x48] sm:$0xff]  ;;  %v78_v55 = vld [vmem:[#allocation2 + $0x50] sm:$0xff] }
  0x44   :  { %v79_v56 = vld [vmem:[#allocation2 + $0x58] sm:$0xff]  ;;  %v80_v57 = vld [vmem:[#allocation2 + $0x60] sm:$0xff]  ;;  %v81_v58 = vld [vmem:[#allocation2 + $0x68] sm:$0xff] }
  0x45   :  { %v82_v59 = vld [vmem:[#allocation2 + $0x70] sm:$0xff]  ;;  %v83_v60 = vld [vmem:[#allocation2 + $0x78] sm:$0xff]  ;;  %v729_v0 = vld [vmem:[%s1479_s2] ss:$0 sm:$0xff] }
  0x46   :  { %924 = vmatpush3.bf16.msra.mxu0 %v921_v12  ;;  %952 = vmatpush3.bf16.msra.mxu1 %v949_v26  ;;  %v282_v61 = vld [vmem:[#allocation7 + $0x70] sm:$0xff]  ;;  %v283_v62 = vld [vmem:[#allocation7 + $0x78] sm:$0xff] }
  0x47   :  { %926 = vmatprep.subr.bf16.mxu0 %v925_v21  ;;  %954 = vmatprep.subr.bf16.mxu1 %v953_v32  ;;  %v969_v63 = vpack.c.bf16 %v283_v62, %v282_v61 }
  0x4a   :  { %928 = vmatpush3.bf16.msra.mxu0 %v925_v21  ;;  %956 = vmatpush3.bf16.msra.mxu1 %v953_v32 }
  0x4b   :  { %930 = vmatprep.subr.bf16.mxu0 %v929_v27  ;;  %958 = vmatprep.subr.bf16.mxu1 %v957_v38 }
  0x4e   :  { %932 = vmatpush3.bf16.msra.mxu0 %v929_v27  ;;  %960 = vmatpush3.bf16.msra.mxu1 %v957_v38 }
  0x4f   :  { %934 = vmatprep.subr.bf16.mxu0 %v933_v33  ;;  %962 = vmatprep.subr.bf16.mxu1 %v961_v42 }
  0x52   :  { %936 = vmatpush3.bf16.msra.mxu0 %v933_v33  ;;  %964 = vmatpush3.bf16.msra.mxu1 %v961_v42 }
  0x53   :  { %938 = vmatprep.subr.bf16.mxu0 %v937_v39  ;;  %966 = vmatprep.subr.bf16.mxu1 %v965_v46 }
  0x56   :  { %940 = vmatpush3.bf16.msra.mxu0 %v937_v39  ;;  %968 = vmatpush3.bf16.msra.mxu1 %v965_v46 }
  0x57   :  { %970 = vmatprep.subr.bf16.mxu1 %v969_v63 }
  0x59   :  { %830 = vmatmul.mubr.f32.vlgmr.msra.gmra.mrb[0].mxu0 %v69_v45 }
  0x5a   :  { %832 = vmatprep.mubr.f32.mxu0 %v70_v47  ;;  %972 = vmatpush3.bf16.msra.mxu1 %v969_v63 }
  0x5d   :  { %833 = vmatmul.mubr.f32.gmra.mrb[2].mxu0 %v71_v48 }
  0x5e   :  { %835 = vmatprep.mubr.f32.mxu0 %v72_v49  ;;  %v436_v49 = vlaneseq }
  0x61   :  { %836 = vmatmul.mubr.f32.gmra.mrb[4].mxu0 %v73_v50  ;;  %v1206_v50 = vand.u32 127, %v436_v49 }
  0x62   :  { %838 = vmatprep.mubr.f32.mxu0 %v74_v51  ;;  %v730_v51 = vld [vmem:[%s1481_s4] ss:$0 sm:$0xff] }
  0x63   :  { %vm438_vm0 = vcmp.lt.s32.totalorder %v1206_v50, 32 }
  0x65   :  { %839 = vmatmul.mubr.f32.gmra.mrb[6].mxu0 %v75_v52 }
  0x66   :  { %841 = vmatprep.mubr.f32.mxu0 %v76_v53 }
  0x69   :  { %842 = vmatmul.mubr.f32.gmra.mrb[8].mxu0 %v77_v54 }
  0x6a   :  { %844 = vmatprep.mubr.f32.mxu0 %v78_v55 }
  0x6d   :  { %845 = vmatmul.mubr.f32.gmra.mrb[10].mxu0 %v79_v56 }
  0x6e   :  { %847 = vmatprep.mubr.f32.mxu0 %v80_v57 }
  0x71   :  { %848 = vmatmul.mubr.f32.gmra.mrb[12].mxu0 %v81_v58 }
  0x72   :  { %850 = vmatprep.mubr.f32.mxu0 %v82_v59 }
  0x75   :  { %851 = vmatmul.mubr.f32.gmra.mrb[14].mxu0 %v83_v60 }
 0x12c   :  { %v831_v1 = vpop.f32.mrb[0].mxu0 }
 0x12d   :  { %v179_v2 = vadd.f32 %v831_v1, %v729_v0  ;;  %v173_v3 = vpop.f32.mrb[1].mxu0 }
 0x12e   :  { %v174_v4 = vadd.f32 %v729_v0, %v173_v3 }
 0x12f   :  { %v253_v7 = vmax.f32 %v179_v2, 0.0 }
 0x130   :  { %v834_v5 = vpop.f32.mrb[2].mxu0  ;;  %v252_v6 = vmax.f32 %v174_v4, 0.0 }
 0x131   :  { %v189_v8 = vadd.f32 %v834_v5, %v729_v0  ;;  %v183_v9 = vpop.f32.mrb[3].mxu0 }
 0x132   :  { %v184_v10 = vadd.f32 %v729_v0, %v183_v9  ;;  %885 = vmatprep.mubr.f32.mxu1 %v252_v6 }
 0x133   :  { %886 = vmatmul.mubr.f32.vlgmr.msra.gmra.mrb[0].mxu1 %v253_v7  ;;  %v255_v13 = vmax.f32 %v189_v8, 0.0 }
 0x134   :  { %v254_v11 = vmax.f32 %v184_v10, 0.0  ;;  %v837_v12 = vpop.f32.mrb[4].mxu0 }
 0x135   :  { %v199_v14 = vadd.f32 %v837_v12, %v729_v0  ;;  %v193_v15 = vpop.f32.mrb[5].mxu0 }
 0x136   :  { %v194_v16 = vadd.f32 %v729_v0, %v193_v15  ;;  %888 = vmatprep.mubr.f32.mxu1 %v254_v11 }
 0x137   :  { %v257_v17 = vmax.f32 %v199_v14, 0.0  ;;  %889 = vmatmul.mubr.f32.gmra.mrb[2].mxu1 %v255_v13 }
 0x138   :  { %v256_v18 = vmax.f32 %v194_v16, 0.0  ;;  %v840_v19 = vpop.f32.mrb[6].mxu0 }
 0x139   :  { %v209_v20 = vadd.f32 %v840_v19, %v729_v0  ;;  %v203_v21 = vpop.f32.mrb[7].mxu0 }
 0x13a   :  { %v204_v22 = vadd.f32 %v729_v0, %v203_v21  ;;  %891 = vmatprep.mubr.f32.mxu1 %v256_v18 }
 0x13b   :  { %v259_v23 = vmax.f32 %v209_v20, 0.0  ;;  %892 = vmatmul.mubr.f32.gmra.mrb[4].mxu1 %v257_v17 }
 0x13c   :  { %v258_v24 = vmax.f32 %v204_v22, 0.0  ;;  %v843_v25 = vpop.f32.mrb[8].mxu0 }
 0x13d   :  { %v219_v26 = vadd.f32 %v843_v25, %v729_v0  ;;  %v213_v27 = vpop.f32.mrb[9].mxu0 }
 0x13e   :  { %v214_v28 = vadd.f32 %v729_v0, %v213_v27  ;;  %894 = vmatprep.mubr.f32.mxu1 %v258_v24 }
 0x13f   :  { %v261_v29 = vmax.f32 %v219_v26, 0.0  ;;  %895 = vmatmul.mubr.f32.gmra.mrb[6].mxu1 %v259_v23 }
 0x140   :  { %v260_v30 = vmax.f32 %v214_v28, 0.0  ;;  %v846_v31 = vpop.f32.mrb[10].mxu0 }
 0x141   :  { %v229_v32 = vadd.f32 %v846_v31, %v729_v0  ;;  %v223_v33 = vpop.f32.mrb[11].mxu0 }
 0x142   :  { %v224_v34 = vadd.f32 %v729_v0, %v223_v33  ;;  %897 = vmatprep.mubr.f32.mxu1 %v260_v30 }
 0x143   :  { %v263_v35 = vmax.f32 %v229_v32, 0.0  ;;  %898 = vmatmul.mubr.f32.gmra.mrb[8].mxu1 %v261_v29 }
 0x144   :  { %v262_v36 = vmax.f32 %v224_v34, 0.0  ;;  %v849_v37 = vpop.f32.mrb[12].mxu0 }
 0x145   :  { %v239_v38 = vadd.f32 %v849_v37, %v729_v0  ;;  %v233_v39 = vpop.f32.mrb[13].mxu0 }
 0x146   :  { %v234_v40 = vadd.f32 %v729_v0, %v233_v39  ;;  %900 = vmatprep.mubr.f32.mxu1 %v262_v36 }
 0x147   :  { %v265_v41 = vmax.f32 %v239_v38, 0.0  ;;  %901 = vmatmul.mubr.f32.gmra.mrb[10].mxu1 %v263_v35 }
 0x148   :  { %v264_v42 = vmax.f32 %v234_v40, 0.0  ;;  %v852_v43 = vpop.f32.mrb[14].mxu0 }
 0x149   :  { %v249_v44 = vadd.f32 %v852_v43, %v729_v0  ;;  %v243_v45 = vpop.f32.mrb[15].mxu0 }
 0x14a   :  { %v244_v46 = vadd.f32 %v729_v0, %v243_v45  ;;  %903 = vmatprep.mubr.f32.mxu1 %v264_v42 }
 0x14b   :  { %v267_v47 = vmax.f32 %v249_v44, 0.0  ;;  %904 = vmatmul.mubr.f32.gmra.mrb[12].mxu1 %v265_v41 }
 0x14c   :  { %v266_v48 = vmax.f32 %v244_v46, 0.0 }
 0x14e   :  { %906 = vmatprep.mubr.f32.mxu1 %v266_v48 }
 0x14f   :  { %907 = vmatmul.mubr.f32.gmra.mrb[14].mxu1 %v267_v47 }
 0x206   :  { %v887_v52 = vpop.f32.mrb[0].mxu1 }
 0x207   :  { %v1212_v53 = vadd.f32 %v887_v52, %v730_v51  ;;  %v357_v54 = vpop.f32.mrb[1].mxu1 }
 0x208   :  { %v1214_v55 = vadd.f32 %v730_v51, %v357_v54 }
 0x209   :  { %v442_v56 = vsel %vm438_vm0, %v1212_v53, 0.0 }
 0x20a   :  { %459 = vadd.xlane.f32.xlu0 %v442_v56  ;;  %v890_v57 = vpop.f32.mrb[2].mxu1  ;;  %v441_v62 = vsel %vm438_vm0, %v1214_v55, 0.0 }
 0x20b   :  { %v1219_v58 = vadd.f32 %v890_v57, %v730_v51  ;;  %v367_v59 = vpop.f32.mrb[3].mxu1 }
 0x20c   :  { %v1221_v60 = vadd.f32 %v730_v51, %v367_v59 }
 0x20d   :  { %v444_v61 = vsel %vm438_vm0, %v1219_v58, 0.0 }
 0x20e   :  { %463 = vadd.xlane.f32.xlu1 %v444_v61  ;;  %v893_v63 = vpop.f32.mrb[4].mxu1  ;;  %457 = vadd.xlane.f32.xlu0 %v441_v62  ;;  %v443_v3 = vsel %vm438_vm0, %v1221_v60, 0.0 }
 0x20f   :  { %v377_v0 = vpop.f32.mrb[5].mxu1  ;;  %v1231_v2 = vadd.f32 %v893_v63, %v730_v51 }
 0x210   :  { %v1229_v1 = vadd.f32 %v730_v51, %v377_v0 }
 0x211   :  { %v446_v9 = vsel %vm438_vm0, %v1231_v2, 0.0 }
 0x212   :  { %v896_v4 = vpop.f32.mrb[6].mxu1  ;;  %461 = vadd.xlane.f32.xlu1 %v443_v3  ;;  %v445_v5 = vsel %vm438_vm0, %v1229_v1, 0.0 }
 0x213   :  { %v387_v6 = vpop.f32.mrb[7].mxu1  ;;  %465 = vadd.xlane.f32.xlu0 %v445_v5  ;;  %v1241_v8 = vadd.f32 %v896_v4, %v730_v51 }
 0x214   :  { %v1239_v7 = vadd.f32 %v730_v51, %v387_v6 }
 0x215   :  { %v448_v15 = vsel %vm438_vm0, %v1241_v8, 0.0 }
 0x216   :  { %v899_v10 = vpop.f32.mrb[8].mxu1  ;;  %467 = vadd.xlane.f32.xlu1 %v446_v9  ;;  %v447_v11 = vsel %vm438_vm0, %v1239_v7, 0.0 }
 0x217   :  { %v397_v12 = vpop.f32.mrb[9].mxu1  ;;  %469 = vadd.xlane.f32.xlu0 %v447_v11  ;;  %v1251_v14 = vadd.f32 %v899_v10, %v730_v51 }
 0x218   :  { %v1249_v13 = vadd.f32 %v730_v51, %v397_v12 }
 0x219   :  { %v450_v21 = vsel %vm438_vm0, %v1251_v14, 0.0 }
 0x21a   :  { %v902_v16 = vpop.f32.mrb[10].mxu1  ;;  %471 = vadd.xlane.f32.xlu1 %v448_v15  ;;  %v449_v17 = vsel %vm438_vm0, %v1249_v13, 0.0 }
 0x21b   :  { %v407_v18 = vpop.f32.mrb[11].mxu1  ;;  %473 = vadd.xlane.f32.xlu0 %v449_v17  ;;  %v1261_v20 = vadd.f32 %v902_v16, %v730_v51 }
 0x21c   :  { %v1259_v19 = vadd.f32 %v730_v51, %v407_v18 }
 0x21d   :  { %v452_v27 = vsel %vm438_vm0, %v1261_v20, 0.0 }
 0x21e   :  { %v905_v22 = vpop.f32.mrb[12].mxu1  ;;  %475 = vadd.xlane.f32.xlu1 %v450_v21  ;;  %v451_v23 = vsel %vm438_vm0, %v1259_v19, 0.0 }
 0x21f   :  { %v417_v24 = vpop.f32.mrb[13].mxu1  ;;  %477 = vadd.xlane.f32.xlu0 %v451_v23  ;;  %v1271_v26 = vadd.f32 %v905_v22, %v730_v51 }
 0x220   :  { %v1269_v25 = vadd.f32 %v730_v51, %v417_v24 }
 0x221   :  { %v454_v33 = vsel %vm438_vm0, %v1271_v26, 0.0 }
 0x222   :  { %v908_v28 = vpop.f32.mrb[14].mxu1  ;;  %479 = vadd.xlane.f32.xlu1 %v452_v27  ;;  %v453_v29 = vsel %vm438_vm0, %v1269_v25, 0.0 }
 0x223   :  { %v427_v30 = vpop.f32.mrb[15].mxu1  ;;  %481 = vadd.xlane.f32.xlu0 %v453_v29  ;;  %v1281_v32 = vadd.f32 %v908_v28, %v730_v51 }
 0x224   :  { %v1279_v31 = vadd.f32 %v730_v51, %v427_v30 }
 0x225   :  { %v456_v35 = vsel %vm438_vm0, %v1281_v32, 0.0 }
 0x226   :  { %483 = vadd.xlane.f32.xlu1 %v454_v33  ;;  %v455_v34 = vsel %vm438_vm0, %v1279_v31, 0.0 }
 0x227   :  { %485 = vadd.xlane.f32.xlu0 %v455_v34 }
 0x22a   :  { %487 = vadd.xlane.f32.xlu1 %v456_v35 }
 0x297   :  { %v460_v36 = vpop.xlane.xlu0 %459 }
 0x298   :  { %v490_v37 = vmul.f32 0.03125, %v460_v36 }
 0x29a   :  { %v506_v38 = vsub.f32 %v1212_v53, %v490_v37 }
 0x29b   :  { %v464_v39 = vpop.xlane.xlu1 %463  ;;  %v458_v40 = vpop.xlane.xlu0 %457 }
 0x29c   :  { %v492_v41 = vmul.f32 0.03125, %v464_v39  ;;  %v489_v42 = vmul.f32 0.03125, %v458_v40  ;;  %v1295_v43 = vsel %vm438_vm0, %v506_v38, 0.0 }
 0x29d   :  { %v538_v44 = vmul.f32 %v1295_v43, %v1295_v43 }
 0x29e   :  { %v508_v45 = vsub.f32 %v1219_v58, %v492_v41  ;;  %v505_v46 = vsub.f32 %v1214_v55, %v489_v42 }
 0x29f   :  { %555 = vadd.xlane.f32.xlu1 %v538_v44  ;;  %v462_v47 = vpop.xlane.xlu1 %461 }
 0x2a0   :  { %v491_v48 = vmul.f32 0.03125, %v462_v47  ;;  %v466_v49 = vpop.xlane.xlu0 %465  ;;  %v1303_v51 = vsel %vm438_vm0, %v508_v45, 0.0  ;;  %v1307_v52 = vsel %vm438_vm0, %v505_v46, 0.0 }
 0x2a1   :  { %v493_v53 = vmul.f32 0.03125, %v466_v49  ;;  %v540_v54 = vmul.f32 %v1303_v51, %v1303_v51  ;;  %v537_v56 = vmul.f32 %v1307_v52, %v1307_v52 }
 0x2a2   :  { %v507_v55 = vsub.f32 %v1221_v60, %v491_v48 }
 0x2a3   :  { %v509_v57 = vsub.f32 %v1229_v1, %v493_v53  ;;  %559 = vadd.xlane.f32.xlu1 %v540_v54  ;;  %v468_v58 = vpop.xlane.xlu1 %467  ;;  %553 = vadd.xlane.f32.xlu0 %v537_v56 }
 0x2a4   :  { %v494_v59 = vmul.f32 0.03125, %v468_v58  ;;  %v470_v61 = vpop.xlane.xlu0 %469  ;;  %v1317_v62 = vsel %vm438_vm0, %v507_v55, 0.0 }
 0x2a5   :  { %v495_v63 = vmul.f32 0.03125, %v470_v61  ;;  %v539_v0 = vmul.f32 %v1317_v62, %v1317_v62  ;;  %v1324_v60 = vsel %vm438_vm0, %v509_v57, 0.0 }
 0x2a6   :  { %v510_v3 = vsub.f32 %v1231_v2, %v494_v59  ;;  %v541_v2 = vmul.f32 %v1324_v60, %v1324_v60 }
 0x2a7   :  { %v511_v1 = vsub.f32 %v1239_v7, %v495_v63  ;;  %v472_v4 = vpop.xlane.xlu1 %471  ;;  %557 = vadd.xlane.f32.xlu0 %v539_v0 }
 0x2a8   :  { %v496_v5 = vmul.f32 0.03125, %v472_v4  ;;  %v474_v6 = vpop.xlane.xlu0 %473  ;;  %v1329_v9 = vsel %vm438_vm0, %v510_v3, 0.0 }
 0x2a9   :  { %v497_v10 = vmul.f32 0.03125, %v474_v6  ;;  %v542_v11 = vmul.f32 %v1329_v9, %v1329_v9  ;;  %v1338_v7 = vsel %vm438_vm0, %v511_v1, 0.0 }
 0x2aa   :  { %v512_v12 = vsub.f32 %v1241_v8, %v496_v5  ;;  %v543_v8 = vmul.f32 %v1338_v7, %v1338_v7 }
 0x2ab   :  { %v513_v15 = vsub.f32 %v1249_v13, %v497_v10  ;;  %563 = vadd.xlane.f32.xlu1 %v542_v11  ;;  %v476_v16 = vpop.xlane.xlu1 %475  ;;  %561 = vadd.xlane.f32.xlu0 %v541_v2 }
 0x2ac   :  { %v498_v17 = vmul.f32 0.03125, %v476_v16  ;;  %v478_v18 = vpop.xlane.xlu0 %477  ;;  %v1343_v21 = vsel %vm438_vm0, %v512_v12, 0.0  ;;  %v1407_v16 = vld [vmem:[%s1482_s5] ss:$0 sm:$0xff]  ;;  %s1110_s5 = smov [#allocation8]  }
 0x2ad   :  { %v499_v22 = vmul.f32 0.03125, %v478_v18  ;;  %v544_v23 = vmul.f32 %v1343_v21, %v1343_v21  ;;  %v1352_v13 = vsel %vm438_vm0, %v513_v15, 0.0 }
 0x2ae   :  { %v514_v24 = vsub.f32 %v1251_v14, %v498_v17  ;;  %v545_v14 = vmul.f32 %v1352_v13, %v1352_v13 }
 0x2af   :  { %v515_v27 = vsub.f32 %v1259_v19, %v499_v22  ;;  %567 = vadd.xlane.f32.xlu1 %v544_v23  ;;  %v480_v28 = vpop.xlane.xlu1 %479  ;;  %565 = vadd.xlane.f32.xlu0 %v543_v8 }
 0x2b0   :  { %v500_v29 = vmul.f32 0.03125, %v480_v28  ;;  %v482_v30 = vpop.xlane.xlu0 %481  ;;  %v1357_v33 = vsel %vm438_vm0, %v514_v24, 0.0  ;;  %v1413_v24 = vld [vmem:[%s1483_s6] ss:$0 sm:$0xff]  ;;  %s716_s6 = sshll.u32 %s1110_s5, 4  ;;  %s717_s6 = int_to_ptr.vmem [resolvable:$true] %s716_s6 }
 0x2b1   :  { %v501_v34 = vmul.f32 0.03125, %v482_v30  ;;  %v546_v35 = vmul.f32 %v1357_v33, %v1357_v33  ;;  %v1366_v19 = vsel %vm438_vm0, %v515_v27, 0.0  ;;  %s1077_s21 = scalar_lea.vmem %s717_s6, 2048  ;;  %p1082_p11 = scmp.lt.s32.totalorder %s717_s6, %s717_s6 }
 0x2b2   :  { %v516_v36 = vsub.f32 %v1261_v20, %v500_v29  ;;  %v547_v20 = vmul.f32 %v1366_v19, %v1366_v19  ;;  %p1078_p10 = scmp.ne.s32.totalorder %s717_s6, %s1077_s21  ;;  %p1083_p12 = scmp.lt.s32.totalorder %s1077_s21, %s1077_s21 }
 0x2b3   :  { %v517_v37 = vsub.f32 %v1269_v25, %v501_v34  ;;  %571 = vadd.xlane.f32.xlu1 %v546_v35  ;;  %v484_v38 = vpop.xlane.xlu1 %483  ;;  %569 = vadd.xlane.f32.xlu0 %v545_v14 }
 0x2b4   :  { %v502_v39 = vmul.f32 0.03125, %v484_v38  ;;  %v486_v40 = vpop.xlane.xlu0 %485  ;;  %v1371_v41 = vsel %vm438_vm0, %v516_v36, 0.0  ;;  %p1084_p13 = por %p1083_p12, %p1082_p11 }
 0x2b5   :  { %v503_v42 = vmul.f32 0.03125, %v486_v40  ;;  %v548_v44 = vmul.f32 %v1371_v41, %v1371_v41  ;;  %v1380_v25 = vsel %vm438_vm0, %v517_v37, 0.0 }
 0x2b6   :  { %v518_v45 = vsub.f32 %v1271_v26, %v502_v39  ;;  %v549_v26 = vmul.f32 %v1380_v25, %v1380_v25  ;;  %p1085_p0 = pnand %p1084_p13, %p1078_p10 }
 0x2b7   :  { %v519_v46 = vsub.f32 %v1279_v31, %v503_v42  ;;  %575 = vadd.xlane.f32.xlu1 %v548_v44  ;;  %v488_v47 = vpop.xlane.xlu1 %487  ;;  %573 = vadd.xlane.f32.xlu0 %v547_v20 }
 0x2b8   :  { %v504_v48 = vmul.f32 0.03125, %v488_v47  ;;  %v1385_v49 = vsel %vm438_vm0, %v518_v45, 0.0 }
 0x2b9   :  { %v550_v53 = vmul.f32 %v1385_v49, %v1385_v49  ;;  %v1394_v56 = vsel %vm438_vm0, %v519_v46, 0.0 }
 0x2ba   :  { %v520_v54 = vsub.f32 %v1281_v32, %v504_v48  ;;  %v551_v57 = vmul.f32 %v1394_v56, %v1394_v56 }
 0x2bb   :  { %579 = vadd.xlane.f32.xlu1 %v550_v53  ;;  %577 = vadd.xlane.f32.xlu0 %v549_v26 }
 0x2bc   :  { %v1398_v31 = vsel %vm438_vm0, %v520_v54, 0.0 }
 0x2bd   :  { %v552_v55 = vmul.f32 %v1398_v31, %v1398_v31 }
 0x2bf   :  { %583 = vadd.xlane.f32.xlu1 %v552_v55  ;;  %581 = vadd.xlane.f32.xlu0 %v551_v57 }
 0x32c   :  { %v556_v58 = vpop.xlane.xlu1 %555 }
 0x32d   :  { %v586_v32 = vmul.f32 0.03125, %v556_v58 }
 0x32f   :  { %v602_v59 = vadd.f32 1e-05, %v586_v32 }
 0x330   :  { %v560_v61 = vpop.xlane.xlu1 %559  ;;  %v554_v63 = vpop.xlane.xlu0 %553 }
 0x331   :  { %979 = vrsqrt.f32 %v602_v59  ;;  %v588_v0 = vmul.f32 0.03125, %v560_v61  ;;  %v585_v3 = vmul.f32 0.03125, %v554_v63 }
 0x333   :  { %v604_v1 = vadd.f32 1e-05, %v588_v0  ;;  %v601_v50 = vadd.f32 1e-05, %v585_v3 }
 0x334   :  { %v558_v4 = vpop.xlane.xlu0 %557 }
 0x335   :  { %981 = vrsqrt.f32 %v604_v1  ;;  %v587_v5 = vmul.f32 0.03125, %v558_v4 }
 0x336   :  { %983 = vrsqrt.f32 %v601_v50 }
 0x337   :  { %v603_v6 = vadd.f32 1e-05, %v587_v5 }
 0x338   :  { %v564_v10 = vpop.xlane.xlu1 %563  ;;  %v562_v11 = vpop.xlane.xlu0 %561 }
 0x339   :  { %985 = vrsqrt.f32 %v603_v6  ;;  %v590_v2 = vmul.f32 0.03125, %v564_v10  ;;  %v589_v12 = vmul.f32 0.03125, %v562_v11 }
 0x33b   :  { %v980_v15 = vpop.eup %979  ;;  %v606_v17 = vadd.f32 1e-05, %v590_v2  ;;  %v605_v18 = vadd.f32 1e-05, %v589_v12 }
 0x33c   :  { %v634_v22 = vmul.f32 %v980_v15, %v1295_v43  ;;  %v568_v23 = vpop.xlane.xlu1 %567  ;;  %v566_v8 = vpop.xlane.xlu0 %565 }
 0x33d   :  { %987 = vrsqrt.f32 %v606_v17  ;;  %v592_v27 = vmul.f32 0.03125, %v568_v23  ;;  %v591_v28 = vmul.f32 0.03125, %v566_v8 }
 0x33e   :  { %v657_v29 = vmul.f32 %v1407_v16, %v634_v22  ;;  %989 = vrsqrt.f32 %v605_v18 }
 0x33f   :  { %v982_v30 = vpop.eup %981  ;;  %v608_v34 = vadd.f32 1e-05, %v592_v27  ;;  %v607_v35 = vadd.f32 1e-05, %v591_v28 }
 0x340   :  { %v984_v14 = vpop.eup %983  ;;  %v680_v36 = vadd.f32 %v1413_v24, %v657_v29  ;;  %v636_v43 = vmul.f32 %v982_v30, %v1303_v51  ;;  %v572_v37 = vpop.xlane.xlu1 %571 }
 0x341   :  { %v570_v38 = vpop.xlane.xlu0 %569  ;;  %v633_v39 = vmul.f32 %v984_v14, %v1307_v52  ;;  %991 = vrsqrt.f32 %v608_v34  ;;  %v594_v40 = vmul.f32 0.03125, %v572_v37 }
 0x342   :  { %v593_v42 = vmul.f32 0.03125, %v570_v38  ;;  %696 = vst [vmem:[#allocation8 + $0x8] sm:$0xff] %v680_v36  ;;  %v659_v44 = vmul.f32 %v1407_v16, %v636_v43  ;;  %993 = vrsqrt.f32 %v607_v35 }
 0x343   :  { %v986_v20 = vpop.eup %985  ;;  %v656_v45 = vmul.f32 %v1407_v16, %v633_v39  ;;  %v610_v46 = vadd.f32 1e-05, %v594_v40 }
 0x344   :  { %v609_v47 = vadd.f32 1e-05, %v593_v42  ;;  %v682_v48 = vadd.f32 %v1413_v24, %v659_v44  ;;  %v635_v51 = vmul.f32 %v986_v20, %v1317_v62  ;;  %v576_v53 = vpop.xlane.xlu1 %575 }
 0x345   :  { %v574_v26 = vpop.xlane.xlu0 %573  ;;  %v679_v52 = vadd.f32 %v1413_v24, %v656_v45  ;;  %995 = vrsqrt.f32 %v610_v46  ;;  %v596_v54 = vmul.f32 0.03125, %v576_v53 }
 0x346   :  { %v595_v55 = vmul.f32 0.03125, %v574_v26  ;;  %698 = vst [vmem:[#allocation8 + $0x18] sm:$0xff] %v682_v48  ;;  %v658_v57 = vmul.f32 %v1407_v16, %v635_v51  ;;  %997 = vrsqrt.f32 %v609_v47 }
 0x347   :  { %v988_v58 = vpop.eup %987  ;;  %695 = vst [vmem:[#allocation8] sm:$0xff] %v679_v52  ;;  %v612_v32 = vadd.f32 1e-05, %v596_v54 }
 0x348   :  { %v611_v59 = vadd.f32 1e-05, %v595_v55  ;;  %v990_v61 = vpop.eup %989  ;;  %v681_v63 = vadd.f32 %v1413_v24, %v658_v57  ;;  %v638_v62 = vmul.f32 %v988_v58, %v1329_v9  ;;  %v580_v0 = vpop.xlane.xlu1 %579 }
 0x349   :  { %v578_v3 = vpop.xlane.xlu0 %577  ;;  %v637_v1 = vmul.f32 %v990_v61, %v1324_v60  ;;  %999 = vrsqrt.f32 %v612_v32  ;;  %v598_v50 = vmul.f32 0.03125, %v580_v0 }
 0x34a   :  { %v597_v4 = vmul.f32 0.03125, %v578_v3  ;;  %697 = vst [vmem:[#allocation8 + $0x10] sm:$0xff] %v681_v63  ;;  %v661_v5 = vmul.f32 %v1407_v16, %v638_v62  ;;  %1001 = vrsqrt.f32 %v611_v59 }
 0x34b   :  { %v992_v6 = vpop.eup %991  ;;  %v660_v10 = vmul.f32 %v1407_v16, %v637_v1  ;;  %v614_v11 = vadd.f32 1e-05, %v598_v50 }
 0x34c   :  { %v613_v2 = vadd.f32 1e-05, %v597_v4  ;;  %v994_v12 = vpop.eup %993  ;;  %v684_v15 = vadd.f32 %v1413_v24, %v661_v5  ;;  %v640_v9 = vmul.f32 %v992_v6, %v1343_v21  ;;  %v584_v17 = vpop.xlane.xlu1 %583 }
 0x34d   :  { %v582_v18 = vpop.xlane.xlu0 %581  ;;  %v683_v60 = vadd.f32 %v1413_v24, %v660_v10  ;;  %v639_v22 = vmul.f32 %v994_v12, %v1338_v7  ;;  %1003 = vrsqrt.f32 %v614_v11  ;;  %v600_v23 = vmul.f32 0.03125, %v584_v17 }
 0x34e   :  { %700 = vst [vmem:[#allocation8 + $0x28] sm:$0xff] %v684_v15  ;;  %v663_v8 = vmul.f32 %v1407_v16, %v640_v9  ;;  %1005 = vrsqrt.f32 %v613_v2  ;;  %v599_v27 = vmul.f32 0.03125, %v582_v18 }
 0x34f   :  { %v996_v28 = vpop.eup %995  ;;  %699 = vst [vmem:[#allocation8 + $0x20] sm:$0xff] %v683_v60  ;;  %v662_v29 = vmul.f32 %v1407_v16, %v639_v22  ;;  %v616_v30 = vadd.f32 1e-05, %v600_v23 }
 0x350   :  { %v998_v34 = vpop.eup %997  ;;  %v686_v21 = vadd.f32 %v1413_v24, %v663_v8  ;;  %v642_v35 = vmul.f32 %v996_v28, %v1357_v33  ;;  %v615_v14 = vadd.f32 1e-05, %v599_v27 }
 0x351   :  { %v685_v7 = vadd.f32 %v1413_v24, %v662_v29  ;;  %v641_v36 = vmul.f32 %v998_v34, %v1352_v13  ;;  %1007 = vrsqrt.f32 %v616_v30 }
 0x352   :  { %702 = vst [vmem:[#allocation8 + $0x38] sm:$0xff] %v686_v21  ;;  %v665_v43 = vmul.f32 %v1407_v16, %v642_v35  ;;  %1009 = vrsqrt.f32 %v615_v14 }
 0x353   :  { %v1000_v37 = vpop.eup %999  ;;  %701 = vst [vmem:[#allocation8 + $0x30] sm:$0xff] %v685_v7  ;;  %v664_v38 = vmul.f32 %v1407_v16, %v641_v36 }
 0x354   :  { %v1002_v39 = vpop.eup %1001  ;;  %v688_v40 = vadd.f32 %v1413_v24, %v665_v43  ;;  %v644_v42 = vmul.f32 %v1000_v37, %v1371_v41 }
 0x355   :  { %v687_v33 = vadd.f32 %v1413_v24, %v664_v38  ;;  %v643_v44 = vmul.f32 %v1002_v39, %v1366_v19 }
 0x356   :  { %704 = vst [vmem:[#allocation8 + $0x48] sm:$0xff] %v688_v40  ;;  %v667_v13 = vmul.f32 %v1407_v16, %v644_v42 }
 0x357   :  { %v1004_v20 = vpop.eup %1003  ;;  %703 = vst [vmem:[#allocation8 + $0x40] sm:$0xff] %v687_v33  ;;  %v666_v45 = vmul.f32 %v1407_v16, %v643_v44 }
 0x358   :  { %v1006_v46 = vpop.eup %1005  ;;  %v690_v47 = vadd.f32 %v1413_v24, %v667_v13  ;;  %v646_v48 = vmul.f32 %v1004_v20, %v1385_v49 }
 0x359   :  { %v689_v51 = vadd.f32 %v1413_v24, %v666_v45  ;;  %v645_v41 = vmul.f32 %v1006_v46, %v1380_v25 }
 0x35a   :  { %706 = vst [vmem:[#allocation8 + $0x58] sm:$0xff] %v690_v47  ;;  %v669_v53 = vmul.f32 %v1407_v16, %v646_v48 }
 0x35b   :  { %v1008_v19 = vpop.eup %1007  ;;  %705 = vst [vmem:[#allocation8 + $0x50] sm:$0xff] %v689_v51  ;;  %v668_v26 = vmul.f32 %v1407_v16, %v645_v41 }
 0x35c   :  { %v1010_v52 = vpop.eup %1009  ;;  %v692_v54 = vadd.f32 %v1413_v24, %v669_v53  ;;  %v648_v55 = vmul.f32 %v1008_v19, %v1398_v31 }
 0x35d   :  { %v691_v57 = vadd.f32 %v1413_v24, %v668_v26  ;;  %v647_v49 = vmul.f32 %v1010_v52, %v1394_v56 }
 0x35e   :  { %708 = vst [vmem:[#allocation8 + $0x68] sm:$0xff] %v692_v54  ;;  %v671_v58 = vmul.f32 %v1407_v16, %v648_v55 }
 0x35f   :  { %707 = vst [vmem:[#allocation8 + $0x60] sm:$0xff] %v691_v57  ;;  %v670_v25 = vmul.f32 %v1407_v16, %v647_v49 }
 0x360   :  { %v694_v32 = vadd.f32 %v1413_v24, %v671_v58 }
 0x361   :  { %v693_v59 = vadd.f32 %v1413_v24, %v670_v25 }
 0x362   :  { %710 = vst [vmem:[#allocation8 + $0x78] sm:$0xff] %v694_v32 }
 0x363   :  { %709 = vst [vmem:[#allocation8 + $0x70] sm:$0xff] %v693_v59 }
 0x364   :  { %1088 = shalt.err (!%p1085_p0)
}
 0x365   :  { %s1089_s24 = scalar_lea.hbm %s1484_s7, 2048 }
 0x366   :  { %p1090_p1 = scmp.ne.s32.totalorder %s1484_s7, %s1089_s24  ;;  %p1093_p2 = scmp.lt.u32.totalorder %s1089_s24, %s1484_s7 }
 0x368   :  { %p1095_p3 = pnand %p1093_p2, %p1090_p1 }
 0x36a   :  { %1098 = shalt.err (!%p1095_p3)
}
 0x36b   :  { %722 = dma.vmem_to_hbm [thread:$0]  %s717_s6, 2048, %s1484_s7, [#allocation4], %s1107_s13, %s1107_s13, %s1108_s14  }
 0x36c   :  { %1103 = dma.done.wait [#allocation4], 2048  }
 0x36d   :  { %1104 = vsyncadd [#allocation4], 4294965248 }
 0x36e   :  { %726 = vsyncpa [#allocation3], 1 }
 0x36f   :  { %727 = vsyncpa [#allocation6], 1 }
 0x370   :  { %728 = vsyncpa [#allocation4], 1 }

</bundles_post_ra>
